<compile_context>
chip_gen: v7x
topology: tpu7x:2x2x1
jax: 0.10.0
libtpu: 0.0.40
codegen_flags: <defaults>
</compile_context>

<pallas_src>
import jax
import jax.numpy as jnp
from jax.experimental import pallas as pl
from jax.experimental.pallas import tpu as pltpu


def make_lstm_kernel(B, T, H, O, NL):
    G = 4 * H          # gate width (i, f, g, o) — PyTorch gate order
    R = T * B          # rows of the time-major activation slab

    def kernel(x_ref, w_ih_ref, w_hh_ref, b_ref, w_lin_ref, b_lin_ref,
               out_ref, seq_buf, gates_buf):
        # x_ref:     (R, H)     time-major input rows, row r = (t = r // B, b = r % B)
        # w_ih_ref:  (NL, H, G) input->gates weights, pre-transposed (in, 4H)
        # w_hh_ref:  (NL, H, G) hidden->gates weights, pre-transposed (in, 4H)
        # b_ref:     (NL, 1, G) combined bias  b_ih + b_hh
        # w_lin_ref: (H, O)     final Linear weight, pre-transposed (in, out)
        # b_lin_ref: (1, O)
        # out_ref:   (R, O)     time-major output rows
        # seq_buf:   (R, H)     VMEM scratch: current layer's hidden-state sequence
        # gates_buf: (R, G)     VMEM scratch: batched input projections for a layer

        for layer in range(NL):                       # static unroll; NL is small
            # ---- batched input projection: one deep matmul for the whole sequence ----
            xs = x_ref[...] if layer == 0 else seq_buf[...]            # (R, H)
            gates_buf[...] = (
                jnp.dot(xs, w_ih_ref[layer], preferred_element_type=jnp.float32)
                + b_ref[layer])                                        # (R, G)

            w_hh = w_hh_ref[layer]                                     # (H, G), hoisted

            # ---- sequential recurrence over time (inherent data dependence) ----
            def step(t, carry):
                h, c = carry                                           # (B, H) each
                r0 = pl.multiple_of(t * B, B)
                g = gates_buf[pl.ds(r0, B), :] + jnp.dot(
                    h, w_hh, preferred_element_type=jnp.float32)       # (B, G)
                i_g = jax.nn.sigmoid(g[:, 0 * H:1 * H])
                f_g = jax.nn.sigmoid(g[:, 1 * H:2 * H])
                g_g = jnp.tanh(g[:, 2 * H:3 * H])
                o_g = jax.nn.sigmoid(g[:, 3 * H:4 * H])
                c = f_g * c + i_g * g_g
                h = o_g * jnp.tanh(c)
                seq_buf[pl.ds(r0, B), :] = h
                return (h, c)

            zeros = jnp.zeros((B, H), jnp.float32)
            jax.lax.fori_loop(0, T, step, (zeros, zeros), unroll=True)

        # ---- final Linear over all (t, b) rows at once; one contiguous 2-D store ----
        y = jnp.dot(seq_buf[...], w_lin_ref[...],
                    preferred_element_type=jnp.float32) + b_lin_ref[...]
        out_ref[...] = y.astype(out_ref.dtype)

    # Advisory cost estimate (matmuls + gate transcendentals + IO bytes).
    flops = NL * 4 * R * H * G + 2 * R * H * O
    transcendentals = NL * R * 5 * H
    bytes_accessed = 4 * (R * H + R * O + NL * (2 * H * G + G) + H * O + O)

    grid_spec = pltpu.PrefetchScalarGridSpec(
        num_scalar_prefetch=0,
        grid=(1,),                                        # single step: whole problem in VMEM
        in_specs=[
            pl.BlockSpec((R, H), lambda i: (0, 0)),           # x (time-major rows)
            pl.BlockSpec((NL, H, G), lambda i: (0, 0, 0)),    # w_ih (all layers)
            pl.BlockSpec((NL, H, G), lambda i: (0, 0, 0)),    # w_hh (all layers)
            pl.BlockSpec((NL, 1, G), lambda i: (0, 0, 0)),    # combined biases
            pl.BlockSpec((H, O), lambda i: (0, 0)),           # linear weight
            pl.BlockSpec((1, O), lambda i: (0, 0)),           # linear bias
        ],
        out_specs=pl.BlockSpec((R, O), lambda i: (0, 0)),
        scratch_shapes=[
            pltpu.VMEM((R, H), jnp.float32),                  # seq_buf
            pltpu.VMEM((R, G), jnp.float32),                  # gates_buf
        ],
    )

    return pl.pallas_call(
        kernel,
        out_shape=jax.ShapeDtypeStruct((R, O), jnp.float32),
        grid_spec=grid_spec,
        compiler_params=pltpu.CompilerParams(
            dimension_semantics=("arbitrary",)),
        cost_estimate=pl.CostEstimate(
            flops=flops, transcendentals=transcendentals,
            bytes_accessed=bytes_accessed),
    )


def lstm_forward(latents, params):
    """latents: (B, T, H) float32.  Returns (B, T, O) like the PyTorch module."""
    B, T, H = latents.shape
    NL = params["w_ih"].shape[0]
    O = params["w_lin"].shape[1]
    # Time-major 2-D slab so the kernel works on lane-contiguous (rows, H) blocks.
    x2d = jnp.transpose(latents, (1, 0, 2)).reshape(T * B, H)
    kern = make_lstm_kernel(B, T, H, O, NL)
    y2d = kern(x2d, params["w_ih"], params["w_hh"], params["b"],
               params["w_lin"], params["b_lin"])
    return jnp.transpose(y2d.reshape(T, B, O), (1, 0, 2))


def reference_forward(latents, params):
    """Pure-JAX reference of the same math (PyTorch LSTM semantics, zero init states)."""
    B, T, H = latents.shape
    NL = params["w_ih"].shape[0]
    x = latents.astype(jnp.float32)
    for l in range(NL):
        w_ih, w_hh, b = params["w_ih"][l], params["w_hh"][l], params["b"][l]
        h = jnp.zeros((B, H), jnp.float32)
        c = jnp.zeros((B, H), jnp.float32)
        outs = []
        for t in range(T):
            g = x[:, t, :] @ w_ih + h @ w_hh + b
            i_g = jax.nn.sigmoid(g[:, :H])
            f_g = jax.nn.sigmoid(g[:, H:2 * H])
            g_g = jnp.tanh(g[:, 2 * H:3 * H])
            o_g = jax.nn.sigmoid(g[:, 3 * H:])
            c = f_g * c + i_g * g_g
            h = o_g * jnp.tanh(c)
            outs.append(h)
        x = jnp.stack(outs, axis=1)
    return x @ params["w_lin"] + params["b_lin"].reshape(1, 1, -1)


if __name__ == "__main__":
    # Small shapes consistent with the module: latents is (batch, seq, latent_size).
    B, T, H, O, NL = 2, 8, 32, 16, 2   # batch, seq, latent_size, output_size, hidden_layers

    key = jax.random.PRNGKey(0)
    k_x, k_wi, k_wh, k_b, k_wl, k_bl = jax.random.split(key, 6)
    s = 0.1

    latents = jax.random.normal(k_x, (B, T, H), dtype=jnp.float32)
    params = {
        # PyTorch weight_ih_l{l}: (4H, in) -> stored transposed (in, 4H), stacked over layers
        "w_ih": jax.random.normal(k_wi, (NL, H, 4 * H), dtype=jnp.float32) * s,
        # PyTorch weight_hh_l{l}: (4H, H) -> stored transposed (H, 4H)
        "w_hh": jax.random.normal(k_wh, (NL, H, 4 * H), dtype=jnp.float32) * s,
        # combined bias b_ih_l{l} + b_hh_l{l}
        "b": jax.random.normal(k_b, (NL, 1, 4 * H), dtype=jnp.float32) * s,
        # PyTorch Linear weight (O, H) -> stored transposed (H, O)
        "w_lin": jax.random.normal(k_wl, (H, O), dtype=jnp.float32) * s,
        "b_lin": jax.random.normal(k_bl, (1, O), dtype=jnp.float32) * s,
    }

    out = jax.block_until_ready(lstm_forward(latents, params))
    ref = jax.block_until_ready(reference_forward(latents, params))

    assert out.shape == (B, T, O)
    assert jnp.allclose(out, ref, atol=5e-3, rtol=5e-3), "mismatch vs pure-JAX reference"

    print("KERNEL_OK")
</pallas_src>

<mosaic_0001>
module attributes {stable_mosaic.version = 11 : i64} {
  func.func @kernel(%arg0: i32, %arg1: memref<16x32xf32, #tpu.memory_space<vmem>>, %arg2: memref<2x32x128xf32, #tpu.memory_space<vmem>>, %arg3: memref<2x32x128xf32, #tpu.memory_space<vmem>>, %arg4: memref<2x1x128xf32, #tpu.memory_space<vmem>>, %arg5: memref<32x16xf32, #tpu.memory_space<vmem>>, %arg6: memref<1x16xf32, #tpu.memory_space<vmem>>, %arg7: memref<16x16xf32, #tpu.memory_space<vmem>>, %arg8: memref<16x32xf32, #tpu.memory_space<vmem>>, %arg9: memref<16x128xf32, #tpu.memory_space<vmem>>) attributes {dimension_semantics = [#tpu.dimension_semantics<arbitrary>], iteration_bounds = array<i64: 1>, scalar_prefetch = 0 : i64, scratch_operands = 2 : i64, tpu.core_type = #tpu.core_type<tc>, window_params = [{pipeline_mode = #tpu.pipeline_mode<synchronous>, transform_indices = @transform_0, window_bounds = array<i64: 16, 32>}, {pipeline_mode = #tpu.pipeline_mode<synchronous>, transform_indices = @transform_1, window_bounds = array<i64: 2, 32, 128>}, {pipeline_mode = #tpu.pipeline_mode<synchronous>, transform_indices = @transform_2, window_bounds = array<i64: 2, 32, 128>}, {pipeline_mode = #tpu.pipeline_mode<synchronous>, transform_indices = @transform_3, window_bounds = array<i64: 2, 1, 128>}, {pipeline_mode = #tpu.pipeline_mode<synchronous>, transform_indices = @transform_4, window_bounds = array<i64: 32, 16>}, {pipeline_mode = #tpu.pipeline_mode<synchronous>, transform_indices = @transform_5, window_bounds = array<i64: 1, 16>}, {pipeline_mode = #tpu.pipeline_mode<synchronous>, transform_indices = @transform_6, window_bounds = array<i64: 16, 16>}]} {
    %c0 = arith.constant 0 : index
    %c0_0 = arith.constant 0 : index
    %0 = vector.load %arg1[%c0, %c0_0] : memref<16x32xf32, #tpu.memory_space<vmem>>, vector<16x32xf32>
    %c0_1 = arith.constant 0 : index
    %c0_2 = arith.constant 0 : index
    %c0_3 = arith.constant 0 : index
    %1 = vector.load %arg2[%c0_1, %c0_2, %c0_3] : memref<2x32x128xf32, #tpu.memory_space<vmem>>, vector<1x32x128xf32>
    %2 = vector.shape_cast %1 : vector<1x32x128xf32> to vector<32x128xf32>
    %cst = arith.constant dense<0.000000e+00> : vector<16x128xf32>
    %3 = tpu.matmul %0, %2, %cst {dimension_numbers = #tpu.dot_dimension_numbers<[1], [0], [0], [1], [0, 0, 1, 1], [], []>} : vector<16x32xf32>, vector<32x128xf32>, vector<16x128xf32> -> vector<16x128xf32>
    %c0_4 = arith.constant 0 : index
    %c0_5 = arith.constant 0 : index
    %c0_6 = arith.constant 0 : index
    %4 = vector.load %arg4[%c0_4, %c0_5, %c0_6] : memref<2x1x128xf32, #tpu.memory_space<vmem>>, vector<1x1x128xf32>
    %5 = vector.shape_cast %4 : vector<1x1x128xf32> to vector<1x128xf32>
    %6 = vector.broadcast %5 : vector<1x128xf32> to vector<16x128xf32>
    %7 = arith.addf %3, %6 : vector<16x128xf32>
    %c0_7 = arith.constant 0 : index
    %c0_8 = arith.constant 0 : index
    %8 = vector.load %arg9[%c0_7, %c0_8] : memref<16x128xf32, #tpu.memory_space<vmem>>, vector<16x128xf32>
    tpu.vector_store %arg9[%c0_7, %c0_8], %7 {strides = array<i32>} : memref<16x128xf32, #tpu.memory_space<vmem>>, vector<16x128xf32>,
    %c0_9 = arith.constant 0 : index
    %c0_10 = arith.constant 0 : index
    %c0_11 = arith.constant 0 : index
    %9 = vector.load %arg3[%c0_9, %c0_10, %c0_11] : memref<2x32x128xf32, #tpu.memory_space<vmem>>, vector<1x32x128xf32>
    %10 = vector.shape_cast %9 : vector<1x32x128xf32> to vector<32x128xf32>
    %cst_12 = arith.constant 0.000000e+00 : f32
    %11 = vector.broadcast %cst_12 : f32 to vector<2x32xf32>
    %c0_i32 = arith.constant 0 : i32
    %c2_i32 = arith.constant 2 : i32
    %12 = arith.muli %c0_i32, %c2_i32 : i32
    %13 = tpu.assume_multiple %12, 2 : i32
    %14 = arith.index_cast %13 : i32 to index
    %c0_13 = arith.constant 0 : index
    %15 = vector.load %arg9[%14, %c0_13] : memref<16x128xf32, #tpu.memory_space<vmem>>, vector<2x128xf32>
    %cst_14 = arith.constant dense<0.000000e+00> : vector<2x128xf32>
    %16 = tpu.matmul %11, %10, %cst_14 {dimension_numbers = #tpu.dot_dimension_numbers<[1], [0], [0], [1], [0, 0, 1, 1], [], []>} : vector<2x32xf32>, vector<32x128xf32>, vector<2x128xf32> -> vector<2x128xf32>
    %17 = arith.addf %15, %16 : vector<2x128xf32>
    %18 = vector.extract_strided_slice %17 {offsets = [0, 0], sizes = [2, 32], strides = [1, 1]} : vector<2x128xf32> to vector<2x32xf32>
    %19 = arith.negf %18 : vector<2x32xf32>
    %20 = math.exp %19 : vector<2x32xf32>
    %cst_15 = arith.constant 1.000000e+00 : f32
    %21 = vector.broadcast %cst_15 : f32 to vector<2x32xf32>
    %22 = arith.addf %21, %20 : vector<2x32xf32>
    %23 = arith.divf %21, %22 : vector<2x32xf32>
    %24 = vector.extract_strided_slice %17 {offsets = [0, 32], sizes = [2, 32], strides = [1, 1]} : vector<2x128xf32> to vector<2x32xf32>
    %25 = arith.negf %24 : vector<2x32xf32>
    %26 = math.exp %25 : vector<2x32xf32>
    %cst_16 = arith.constant 1.000000e+00 : f32
    %27 = vector.broadcast %cst_16 : f32 to vector<2x32xf32>
    %28 = arith.addf %27, %26 : vector<2x32xf32>
    %29 = arith.divf %27, %28 : vector<2x32xf32>
    %30 = vector.extract_strided_slice %17 {offsets = [0, 64], sizes = [2, 32], strides = [1, 1]} : vector<2x128xf32> to vector<2x32xf32>
    %31 = math.tanh %30 : vector<2x32xf32>
    %32 = vector.extract_strided_slice %17 {offsets = [0, 96], sizes = [2, 32], strides = [1, 1]} : vector<2x128xf32> to vector<2x32xf32>
    %33 = arith.negf %32 : vector<2x32xf32>
    %34 = math.exp %33 : vector<2x32xf32>
    %cst_17 = arith.constant 1.000000e+00 : f32
    %35 = vector.broadcast %cst_17 : f32 to vector<2x32xf32>
    %36 = arith.addf %35, %34 : vector<2x32xf32>
    %37 = arith.divf %35, %36 : vector<2x32xf32>
    %38 = arith.mulf %29, %11 : vector<2x32xf32>
    %39 = arith.mulf %23, %31 : vector<2x32xf32>
    %40 = arith.addf %38, %39 : vector<2x32xf32>
    %41 = math.tanh %40 : vector<2x32xf32>
    %42 = arith.mulf %37, %41 : vector<2x32xf32>
    %43 = arith.index_cast %13 : i32 to index
    %c0_18 = arith.constant 0 : index
    %44 = vector.load %arg8[%43, %c0_18] : memref<16x32xf32, #tpu.memory_space<vmem>>, vector<2x32xf32>
    tpu.vector_store %arg8[%43, %c0_18], %42 {strides = array<i32>} : memref<16x32xf32, #tpu.memory_space<vmem>>, vector<2x32xf32>,
    %c1_i32 = arith.constant 1 : i32
    %c2_i32_19 = arith.constant 2 : i32
    %45 = arith.muli %c1_i32, %c2_i32_19 : i32
    %46 = tpu.assume_multiple %45, 2 : i32
    %47 = arith.index_cast %46 : i32 to index
    %c0_20 = arith.constant 0 : index
    %48 = vector.load %arg9[%47, %c0_20] : memref<16x128xf32, #tpu.memory_space<vmem>>, vector<2x128xf32>
    %cst_21 = arith.constant dense<0.000000e+00> : vector<2x128xf32>
    %49 = tpu.matmul %42, %10, %cst_21 {dimension_numbers = #tpu.dot_dimension_numbers<[1], [0], [0], [1], [0, 0, 1, 1], [], []>} : vector<2x32xf32>, vector<32x128xf32>, vector<2x128xf32> -> vector<2x128xf32>
    %50 = arith.addf %48, %49 : vector<2x128xf32>
    %51 = vector.extract_strided_slice %50 {offsets = [0, 0], sizes = [2, 32], strides = [1, 1]} : vector<2x128xf32> to vector<2x32xf32>
    %52 = arith.negf %51 : vector<2x32xf32>
    %53 = math.exp %52 : vector<2x32xf32>
    %cst_22 = arith.constant 1.000000e+00 : f32
    %54 = vector.broadcast %cst_22 : f32 to vector<2x32xf32>
    %55 = arith.addf %54, %53 : vector<2x32xf32>
    %56 = arith.divf %54, %55 : vector<2x32xf32>
    %57 = vector.extract_strided_slice %50 {offsets = [0, 32], sizes = [2, 32], strides = [1, 1]} : vector<2x128xf32> to vector<2x32xf32>
    %58 = arith.negf %57 : vector<2x32xf32>
    %59 = math.exp %58 : vector<2x32xf32>
    %cst_23 = arith.constant 1.000000e+00 : f32
    %60 = vector.broadcast %cst_23 : f32 to vector<2x32xf32>
    %61 = arith.addf %60, %59 : vector<2x32xf32>
    %62 = arith.divf %60, %61 : vector<2x32xf32>
    %63 = vector.extract_strided_slice %50 {offsets = [0, 64], sizes = [2, 32], strides = [1, 1]} : vector<2x128xf32> to vector<2x32xf32>
    %64 = math.tanh %63 : vector<2x32xf32>
    %65 = vector.extract_strided_slice %50 {offsets = [0, 96], sizes = [2, 32], strides = [1, 1]} : vector<2x128xf32> to vector<2x32xf32>
    %66 = arith.negf %65 : vector<2x32xf32>
    %67 = math.exp %66 : vector<2x32xf32>
    %cst_24 = arith.constant 1.000000e+00 : f32
    %68 = vector.broadcast %cst_24 : f32 to vector<2x32xf32>
    %69 = arith.addf %68, %67 : vector<2x32xf32>
    %70 = arith.divf %68, %69 : vector<2x32xf32>
    %71 = arith.mulf %62, %40 : vector<2x32xf32>
    %72 = arith.mulf %56, %64 : vector<2x32xf32>
    %73 = arith.addf %71, %72 : vector<2x32xf32>
    %74 = math.tanh %73 : vector<2x32xf32>
    %75 = arith.mulf %70, %74 : vector<2x32xf32>
    %76 = arith.index_cast %46 : i32 to index
    %c0_25 = arith.constant 0 : index
    %77 = vector.load %arg8[%76, %c0_25] : memref<16x32xf32, #tpu.memory_space<vmem>>, vector<2x32xf32>
    tpu.vector_store %arg8[%76, %c0_25], %75 {strides = array<i32>} : memref<16x32xf32, #tpu.memory_space<vmem>>, vector<2x32xf32>,
    %c2_i32_26 = arith.constant 2 : i32
    %c2_i32_27 = arith.constant 2 : i32
    %78 = arith.muli %c2_i32_26, %c2_i32_27 : i32
    %79 = tpu.assume_multiple %78, 2 : i32
    %80 = arith.index_cast %79 : i32 to index
    %c0_28 = arith.constant 0 : index
    %81 = vector.load %arg9[%80, %c0_28] : memref<16x128xf32, #tpu.memory_space<vmem>>, vector<2x128xf32>
    %cst_29 = arith.constant dense<0.000000e+00> : vector<2x128xf32>
    %82 = tpu.matmul %75, %10, %cst_29 {dimension_numbers = #tpu.dot_dimension_numbers<[1], [0], [0], [1], [0, 0, 1, 1], [], []>} : vector<2x32xf32>, vector<32x128xf32>, vector<2x128xf32> -> vector<2x128xf32>
    %83 = arith.addf %81, %82 : vector<2x128xf32>
    %84 = vector.extract_strided_slice %83 {offsets = [0, 0], sizes = [2, 32], strides = [1, 1]} : vector<2x128xf32> to vector<2x32xf32>
    %85 = arith.negf %84 : vector<2x32xf32>
    %86 = math.exp %85 : vector<2x32xf32>
    %cst_30 = arith.constant 1.000000e+00 : f32
    %87 = vector.broadcast %cst_30 : f32 to vector<2x32xf32>
    %88 = arith.addf %87, %86 : vector<2x32xf32>
    %89 = arith.divf %87, %88 : vector<2x32xf32>
    %90 = vector.extract_strided_slice %83 {offsets = [0, 32], sizes = [2, 32], strides = [1, 1]} : vector<2x128xf32> to vector<2x32xf32>
    %91 = arith.negf %90 : vector<2x32xf32>
    %92 = math.exp %91 : vector<2x32xf32>
    %cst_31 = arith.constant 1.000000e+00 : f32
    %93 = vector.broadcast %cst_31 : f32 to vector<2x32xf32>
    %94 = arith.addf %93, %92 : vector<2x32xf32>
    %95 = arith.divf %93, %94 : vector<2x32xf32>
    %96 = vector.extract_strided_slice %83 {offsets = [0, 64], sizes = [2, 32], strides = [1, 1]} : vector<2x128xf32> to vector<2x32xf32>
    %97 = math.tanh %96 : vector<2x32xf32>
    %98 = vector.extract_strided_slice %83 {offsets = [0, 96], sizes = [2, 32], strides = [1, 1]} : vector<2x128xf32> to vector<2x32xf32>
    %99 = arith.negf %98 : vector<2x32xf32>
    %100 = math.exp %99 : vector<2x32xf32>
    %cst_32 = arith.constant 1.000000e+00 : f32
    %101 = vector.broadcast %cst_32 : f32 to vector<2x32xf32>
    %102 = arith.addf %101, %100 : vector<2x32xf32>
    %103 = arith.divf %101, %102 : vector<2x32xf32>
    %104 = arith.mulf %95, %73 : vector<2x32xf32>
    %105 = arith.mulf %89, %97 : vector<2x32xf32>
    %106 = arith.addf %104, %105 : vector<2x32xf32>
    %107 = math.tanh %106 : vector<2x32xf32>
    %108 = arith.mulf %103, %107 : vector<2x32xf32>
    %109 = arith.index_cast %79 : i32 to index
    %c0_33 = arith.constant 0 : index
    %110 = vector.load %arg8[%109, %c0_33] : memref<16x32xf32, #tpu.memory_space<vmem>>, vector<2x32xf32>
    tpu.vector_store %arg8[%109, %c0_33], %108 {strides = array<i32>} : memref<16x32xf32, #tpu.memory_space<vmem>>, vector<2x32xf32>,
    %c3_i32 = arith.constant 3 : i32
    %c2_i32_34 = arith.constant 2 : i32
    %111 = arith.muli %c3_i32, %c2_i32_34 : i32
    %112 = tpu.assume_multiple %111, 2 : i32
    %113 = arith.index_cast %112 : i32 to index
    %c0_35 = arith.constant 0 : index
    %114 = vector.load %arg9[%113, %c0_35] : memref<16x128xf32, #tpu.memory_space<vmem>>, vector<2x128xf32>
    %cst_36 = arith.constant dense<0.000000e+00> : vector<2x128xf32>
    %115 = tpu.matmul %108, %10, %cst_36 {dimension_numbers = #tpu.dot_dimension_numbers<[1], [0], [0], [1], [0, 0, 1, 1], [], []>} : vector<2x32xf32>, vector<32x128xf32>, vector<2x128xf32> -> vector<2x128xf32>
    %116 = arith.addf %114, %115 : vector<2x128xf32>
    %117 = vector.extract_strided_slice %116 {offsets = [0, 0], sizes = [2, 32], strides = [1, 1]} : vector<2x128xf32> to vector<2x32xf32>
    %118 = arith.negf %117 : vector<2x32xf32>
    %119 = math.exp %118 : vector<2x32xf32>
    %cst_37 = arith.constant 1.000000e+00 : f32
    %120 = vector.broadcast %cst_37 : f32 to vector<2x32xf32>
    %121 = arith.addf %120, %119 : vector<2x32xf32>
    %122 = arith.divf %120, %121 : vector<2x32xf32>
    %123 = vector.extract_strided_slice %116 {offsets = [0, 32], sizes = [2, 32], strides = [1, 1]} : vector<2x128xf32> to vector<2x32xf32>
    %124 = arith.negf %123 : vector<2x32xf32>
    %125 = math.exp %124 : vector<2x32xf32>
    %cst_38 = arith.constant 1.000000e+00 : f32
    %126 = vector.broadcast %cst_38 : f32 to vector<2x32xf32>
    %127 = arith.addf %126, %125 : vector<2x32xf32>
    %128 = arith.divf %126, %127 : vector<2x32xf32>
    %129 = vector.extract_strided_slice %116 {offsets = [0, 64], sizes = [2, 32], strides = [1, 1]} : vector<2x128xf32> to vector<2x32xf32>
    %130 = math.tanh %129 : vector<2x32xf32>
    %131 = vector.extract_strided_slice %116 {offsets = [0, 96], sizes = [2, 32], strides = [1, 1]} : vector<2x128xf32> to vector<2x32xf32>
    %132 = arith.negf %131 : vector<2x32xf32>
    %133 = math.exp %132 : vector<2x32xf32>
    %cst_39 = arith.constant 1.000000e+00 : f32
    %134 = vector.broadcast %cst_39 : f32 to vector<2x32xf32>
    %135 = arith.addf %134, %133 : vector<2x32xf32>
    %136 = arith.divf %134, %135 : vector<2x32xf32>
    %137 = arith.mulf %128, %106 : vector<2x32xf32>
    %138 = arith.mulf %122, %130 : vector<2x32xf32>
    %139 = arith.addf %137, %138 : vector<2x32xf32>
    %140 = math.tanh %139 : vector<2x32xf32>
    %141 = arith.mulf %136, %140 : vector<2x32xf32>
    %142 = arith.index_cast %112 : i32 to index
    %c0_40 = arith.constant 0 : index
    %143 = vector.load %arg8[%142, %c0_40] : memref<16x32xf32, #tpu.memory_space<vmem>>, vector<2x32xf32>
    tpu.vector_store %arg8[%142, %c0_40], %141 {strides = array<i32>} : memref<16x32xf32, #tpu.memory_space<vmem>>, vector<2x32xf32>,
    %c4_i32 = arith.constant 4 : i32
    %c2_i32_41 = arith.constant 2 : i32
    %144 = arith.muli %c4_i32, %c2_i32_41 : i32
    %145 = tpu.assume_multiple %144, 2 : i32
    %146 = arith.index_cast %145 : i32 to index
    %c0_42 = arith.constant 0 : index
    %147 = vector.load %arg9[%146, %c0_42] : memref<16x128xf32, #tpu.memory_space<vmem>>, vector<2x128xf32>
    %cst_43 = arith.constant dense<0.000000e+00> : vector<2x128xf32>
    %148 = tpu.matmul %141, %10, %cst_43 {dimension_numbers = #tpu.dot_dimension_numbers<[1], [0], [0], [1], [0, 0, 1, 1], [], []>} : vector<2x32xf32>, vector<32x128xf32>, vector<2x128xf32> -> vector<2x128xf32>
    %149 = arith.addf %147, %148 : vector<2x128xf32>
    %150 = vector.extract_strided_slice %149 {offsets = [0, 0], sizes = [2, 32], strides = [1, 1]} : vector<2x128xf32> to vector<2x32xf32>
    %151 = arith.negf %150 : vector<2x32xf32>
    %152 = math.exp %151 : vector<2x32xf32>
    %cst_44 = arith.constant 1.000000e+00 : f32
    %153 = vector.broadcast %cst_44 : f32 to vector<2x32xf32>
    %154 = arith.addf %153, %152 : vector<2x32xf32>
    %155 = arith.divf %153, %154 : vector<2x32xf32>
    %156 = vector.extract_strided_slice %149 {offsets = [0, 32], sizes = [2, 32], strides = [1, 1]} : vector<2x128xf32> to vector<2x32xf32>
    %157 = arith.negf %156 : vector<2x32xf32>
    %158 = math.exp %157 : vector<2x32xf32>
    %cst_45 = arith.constant 1.000000e+00 : f32
    %159 = vector.broadcast %cst_45 : f32 to vector<2x32xf32>
    %160 = arith.addf %159, %158 : vector<2x32xf32>
    %161 = arith.divf %159, %160 : vector<2x32xf32>
    %162 = vector.extract_strided_slice %149 {offsets = [0, 64], sizes = [2, 32], strides = [1, 1]} : vector<2x128xf32> to vector<2x32xf32>
    %163 = math.tanh %162 : vector<2x32xf32>
    %164 = vector.extract_strided_slice %149 {offsets = [0, 96], sizes = [2, 32], strides = [1, 1]} : vector<2x128xf32> to vector<2x32xf32>
    %165 = arith.negf %164 : vector<2x32xf32>
    %166 = math.exp %165 : vector<2x32xf32>
    %cst_46 = arith.constant 1.000000e+00 : f32
    %167 = vector.broadcast %cst_46 : f32 to vector<2x32xf32>
    %168 = arith.addf %167, %166 : vector<2x32xf32>
    %169 = arith.divf %167, %168 : vector<2x32xf32>
    %170 = arith.mulf %161, %139 : vector<2x32xf32>
    %171 = arith.mulf %155, %163 : vector<2x32xf32>
    %172 = arith.addf %170, %171 : vector<2x32xf32>
    %173 = math.tanh %172 : vector<2x32xf32>
    %174 = arith.mulf %169, %173 : vector<2x32xf32>
    %175 = arith.index_cast %145 : i32 to index
    %c0_47 = arith.constant 0 : index
    %176 = vector.load %arg8[%175, %c0_47] : memref<16x32xf32, #tpu.memory_space<vmem>>, vector<2x32xf32>
    tpu.vector_store %arg8[%175, %c0_47], %174 {strides = array<i32>} : memref<16x32xf32, #tpu.memory_space<vmem>>, vector<2x32xf32>,
    %c5_i32 = arith.constant 5 : i32
    %c2_i32_48 = arith.constant 2 : i32
    %177 = arith.muli %c5_i32, %c2_i32_48 : i32
    %178 = tpu.assume_multiple %177, 2 : i32
    %179 = arith.index_cast %178 : i32 to index
    %c0_49 = arith.constant 0 : index
    %180 = vector.load %arg9[%179, %c0_49] : memref<16x128xf32, #tpu.memory_space<vmem>>, vector<2x128xf32>
    %cst_50 = arith.constant dense<0.000000e+00> : vector<2x128xf32>
    %181 = tpu.matmul %174, %10, %cst_50 {dimension_numbers = #tpu.dot_dimension_numbers<[1], [0], [0], [1], [0, 0, 1, 1], [], []>} : vector<2x32xf32>, vector<32x128xf32>, vector<2x128xf32> -> vector<2x128xf32>
    %182 = arith.addf %180, %181 : vector<2x128xf32>
    %183 = vector.extract_strided_slice %182 {offsets = [0, 0], sizes = [2, 32], strides = [1, 1]} : vector<2x128xf32> to vector<2x32xf32>
    %184 = arith.negf %183 : vector<2x32xf32>
    %185 = math.exp %184 : vector<2x32xf32>
    %cst_51 = arith.constant 1.000000e+00 : f32
    %186 = vector.broadcast %cst_51 : f32 to vector<2x32xf32>
    %187 = arith.addf %186, %185 : vector<2x32xf32>
    %188 = arith.divf %186, %187 : vector<2x32xf32>
    %189 = vector.extract_strided_slice %182 {offsets = [0, 32], sizes = [2, 32], strides = [1, 1]} : vector<2x128xf32> to vector<2x32xf32>
    %190 = arith.negf %189 : vector<2x32xf32>
    %191 = math.exp %190 : vector<2x32xf32>
    %cst_52 = arith.constant 1.000000e+00 : f32
    %192 = vector.broadcast %cst_52 : f32 to vector<2x32xf32>
    %193 = arith.addf %192, %191 : vector<2x32xf32>
    %194 = arith.divf %192, %193 : vector<2x32xf32>
    %195 = vector.extract_strided_slice %182 {offsets = [0, 64], sizes = [2, 32], strides = [1, 1]} : vector<2x128xf32> to vector<2x32xf32>
    %196 = math.tanh %195 : vector<2x32xf32>
    %197 = vector.extract_strided_slice %182 {offsets = [0, 96], sizes = [2, 32], strides = [1, 1]} : vector<2x128xf32> to vector<2x32xf32>
    %198 = arith.negf %197 : vector<2x32xf32>
    %199 = math.exp %198 : vector<2x32xf32>
    %cst_53 = arith.constant 1.000000e+00 : f32
    %200 = vector.broadcast %cst_53 : f32 to vector<2x32xf32>
    %201 = arith.addf %200, %199 : vector<2x32xf32>
    %202 = arith.divf %200, %201 : vector<2x32xf32>
    %203 = arith.mulf %194, %172 : vector<2x32xf32>
    %204 = arith.mulf %188, %196 : vector<2x32xf32>
    %205 = arith.addf %203, %204 : vector<2x32xf32>
    %206 = math.tanh %205 : vector<2x32xf32>
    %207 = arith.mulf %202, %206 : vector<2x32xf32>
    %208 = arith.index_cast %178 : i32 to index
    %c0_54 = arith.constant 0 : index
    %209 = vector.load %arg8[%208, %c0_54] : memref<16x32xf32, #tpu.memory_space<vmem>>, vector<2x32xf32>
    tpu.vector_store %arg8[%208, %c0_54], %207 {strides = array<i32>} : memref<16x32xf32, #tpu.memory_space<vmem>>, vector<2x32xf32>,
    %c6_i32 = arith.constant 6 : i32
    %c2_i32_55 = arith.constant 2 : i32
    %210 = arith.muli %c6_i32, %c2_i32_55 : i32
    %211 = tpu.assume_multiple %210, 2 : i32
    %212 = arith.index_cast %211 : i32 to index
    %c0_56 = arith.constant 0 : index
    %213 = vector.load %arg9[%212, %c0_56] : memref<16x128xf32, #tpu.memory_space<vmem>>, vector<2x128xf32>
    %cst_57 = arith.constant dense<0.000000e+00> : vector<2x128xf32>
    %214 = tpu.matmul %207, %10, %cst_57 {dimension_numbers = #tpu.dot_dimension_numbers<[1], [0], [0], [1], [0, 0, 1, 1], [], []>} : vector<2x32xf32>, vector<32x128xf32>, vector<2x128xf32> -> vector<2x128xf32>
    %215 = arith.addf %213, %214 : vector<2x128xf32>
    %216 = vector.extract_strided_slice %215 {offsets = [0, 0], sizes = [2, 32], strides = [1, 1]} : vector<2x128xf32> to vector<2x32xf32>
    %217 = arith.negf %216 : vector<2x32xf32>
    %218 = math.exp %217 : vector<2x32xf32>
    %cst_58 = arith.constant 1.000000e+00 : f32
    %219 = vector.broadcast %cst_58 : f32 to vector<2x32xf32>
    %220 = arith.addf %219, %218 : vector<2x32xf32>
    %221 = arith.divf %219, %220 : vector<2x32xf32>
    %222 = vector.extract_strided_slice %215 {offsets = [0, 32], sizes = [2, 32], strides = [1, 1]} : vector<2x128xf32> to vector<2x32xf32>
    %223 = arith.negf %222 : vector<2x32xf32>
    %224 = math.exp %223 : vector<2x32xf32>
    %cst_59 = arith.constant 1.000000e+00 : f32
    %225 = vector.broadcast %cst_59 : f32 to vector<2x32xf32>
    %226 = arith.addf %225, %224 : vector<2x32xf32>
    %227 = arith.divf %225, %226 : vector<2x32xf32>
    %228 = vector.extract_strided_slice %215 {offsets = [0, 64], sizes = [2, 32], strides = [1, 1]} : vector<2x128xf32> to vector<2x32xf32>
    %229 = math.tanh %228 : vector<2x32xf32>
    %230 = vector.extract_strided_slice %215 {offsets = [0, 96], sizes = [2, 32], strides = [1, 1]} : vector<2x128xf32> to vector<2x32xf32>
    %231 = arith.negf %230 : vector<2x32xf32>
    %232 = math.exp %231 : vector<2x32xf32>
    %cst_60 = arith.constant 1.000000e+00 : f32
    %233 = vector.broadcast %cst_60 : f32 to vector<2x32xf32>
    %234 = arith.addf %233, %232 : vector<2x32xf32>
    %235 = arith.divf %233, %234 : vector<2x32xf32>
    %236 = arith.mulf %227, %205 : vector<2x32xf32>
    %237 = arith.mulf %221, %229 : vector<2x32xf32>
    %238 = arith.addf %236, %237 : vector<2x32xf32>
    %239 = math.tanh %238 : vector<2x32xf32>
    %240 = arith.mulf %235, %239 : vector<2x32xf32>
    %241 = arith.index_cast %211 : i32 to index
    %c0_61 = arith.constant 0 : index
    %242 = vector.load %arg8[%241, %c0_61] : memref<16x32xf32, #tpu.memory_space<vmem>>, vector<2x32xf32>
    tpu.vector_store %arg8[%241, %c0_61], %240 {strides = array<i32>} : memref<16x32xf32, #tpu.memory_space<vmem>>, vector<2x32xf32>,
    %c7_i32 = arith.constant 7 : i32
    %c2_i32_62 = arith.constant 2 : i32
    %243 = arith.muli %c7_i32, %c2_i32_62 : i32
    %244 = tpu.assume_multiple %243, 2 : i32
    %245 = arith.index_cast %244 : i32 to index
    %c0_63 = arith.constant 0 : index
    %246 = vector.load %arg9[%245, %c0_63] : memref<16x128xf32, #tpu.memory_space<vmem>>, vector<2x128xf32>
    %cst_64 = arith.constant dense<0.000000e+00> : vector<2x128xf32>
    %247 = tpu.matmul %240, %10, %cst_64 {dimension_numbers = #tpu.dot_dimension_numbers<[1], [0], [0], [1], [0, 0, 1, 1], [], []>} : vector<2x32xf32>, vector<32x128xf32>, vector<2x128xf32> -> vector<2x128xf32>
    %248 = arith.addf %246, %247 : vector<2x128xf32>
    %249 = vector.extract_strided_slice %248 {offsets = [0, 0], sizes = [2, 32], strides = [1, 1]} : vector<2x128xf32> to vector<2x32xf32>
    %250 = arith.negf %249 : vector<2x32xf32>
    %251 = math.exp %250 : vector<2x32xf32>
    %cst_65 = arith.constant 1.000000e+00 : f32
    %252 = vector.broadcast %cst_65 : f32 to vector<2x32xf32>
    %253 = arith.addf %252, %251 : vector<2x32xf32>
    %254 = arith.divf %252, %253 : vector<2x32xf32>
    %255 = vector.extract_strided_slice %248 {offsets = [0, 32], sizes = [2, 32], strides = [1, 1]} : vector<2x128xf32> to vector<2x32xf32>
    %256 = arith.negf %255 : vector<2x32xf32>
    %257 = math.exp %256 : vector<2x32xf32>
    %cst_66 = arith.constant 1.000000e+00 : f32
    %258 = vector.broadcast %cst_66 : f32 to vector<2x32xf32>
    %259 = arith.addf %258, %257 : vector<2x32xf32>
    %260 = arith.divf %258, %259 : vector<2x32xf32>
    %261 = vector.extract_strided_slice %248 {offsets = [0, 64], sizes = [2, 32], strides = [1, 1]} : vector<2x128xf32> to vector<2x32xf32>
    %262 = math.tanh %261 : vector<2x32xf32>
    %263 = vector.extract_strided_slice %248 {offsets = [0, 96], sizes = [2, 32], strides = [1, 1]} : vector<2x128xf32> to vector<2x32xf32>
    %264 = arith.negf %263 : vector<2x32xf32>
    %265 = math.exp %264 : vector<2x32xf32>
    %cst_67 = arith.constant 1.000000e+00 : f32
    %266 = vector.broadcast %cst_67 : f32 to vector<2x32xf32>
    %267 = arith.addf %266, %265 : vector<2x32xf32>
    %268 = arith.divf %266, %267 : vector<2x32xf32>
    %269 = arith.mulf %260, %238 : vector<2x32xf32>
    %270 = arith.mulf %254, %262 : vector<2x32xf32>
    %271 = arith.addf %269, %270 : vector<2x32xf32>
    %272 = math.tanh %271 : vector<2x32xf32>
    %273 = arith.mulf %268, %272 : vector<2x32xf32>
    %274 = arith.index_cast %244 : i32 to index
    %c0_68 = arith.constant 0 : index
    %275 = vector.load %arg8[%274, %c0_68] : memref<16x32xf32, #tpu.memory_space<vmem>>, vector<2x32xf32>
    tpu.vector_store %arg8[%274, %c0_68], %273 {strides = array<i32>} : memref<16x32xf32, #tpu.memory_space<vmem>>, vector<2x32xf32>,
    %c8_i32 = arith.constant 8 : i32
    %c0_69 = arith.constant 0 : index
    %c0_70 = arith.constant 0 : index
    %276 = vector.load %arg8[%c0_69, %c0_70] : memref<16x32xf32, #tpu.memory_space<vmem>>, vector<16x32xf32>
    %c1 = arith.constant 1 : index
    %c0_71 = arith.constant 0 : index
    %c0_72 = arith.constant 0 : index
    %277 = vector.load %arg2[%c1, %c0_71, %c0_72] : memref<2x32x128xf32, #tpu.memory_space<vmem>>, vector<1x32x128xf32>
    %278 = vector.shape_cast %277 : vector<1x32x128xf32> to vector<32x128xf32>
    %cst_73 = arith.constant dense<0.000000e+00> : vector<16x128xf32>
    %279 = tpu.matmul %276, %278, %cst_73 {dimension_numbers = #tpu.dot_dimension_numbers<[1], [0], [0], [1], [0, 0, 1, 1], [], []>} : vector<16x32xf32>, vector<32x128xf32>, vector<16x128xf32> -> vector<16x128xf32>
    %c1_74 = arith.constant 1 : index
    %c0_75 = arith.constant 0 : index
    %c0_76 = arith.constant 0 : index
    %280 = vector.load %arg4[%c1_74, %c0_75, %c0_76] : memref<2x1x128xf32, #tpu.memory_space<vmem>>, vector<1x1x128xf32>
    %281 = vector.shape_cast %280 : vector<1x1x128xf32> to vector<1x128xf32>
    %282 = vector.broadcast %281 : vector<1x128xf32> to vector<16x128xf32>
    %283 = arith.addf %279, %282 : vector<16x128xf32>
    %c0_77 = arith.constant 0 : index
    %c0_78 = arith.constant 0 : index
    %284 = vector.load %arg9[%c0_77, %c0_78] : memref<16x128xf32, #tpu.memory_space<vmem>>, vector<16x128xf32>
    tpu.vector_store %arg9[%c0_77, %c0_78], %283 {strides = array<i32>} : memref<16x128xf32, #tpu.memory_space<vmem>>, vector<16x128xf32>,
    %c1_79 = arith.constant 1 : index
    %c0_80 = arith.constant 0 : index
    %c0_81 = arith.constant 0 : index
    %285 = vector.load %arg3[%c1_79, %c0_80, %c0_81] : memref<2x32x128xf32, #tpu.memory_space<vmem>>, vector<1x32x128xf32>
    %286 = vector.shape_cast %285 : vector<1x32x128xf32> to vector<32x128xf32>
    %cst_82 = arith.constant 0.000000e+00 : f32
    %287 = vector.broadcast %cst_82 : f32 to vector<2x32xf32>
    %c0_i32_83 = arith.constant 0 : i32
    %c2_i32_84 = arith.constant 2 : i32
    %288 = arith.muli %c0_i32_83, %c2_i32_84 : i32
    %289 = tpu.assume_multiple %288, 2 : i32
    %290 = arith.index_cast %289 : i32 to index
    %c0_85 = arith.constant 0 : index
    %291 = vector.load %arg9[%290, %c0_85] : memref<16x128xf32, #tpu.memory_space<vmem>>, vector<2x128xf32>
    %cst_86 = arith.constant dense<0.000000e+00> : vector<2x128xf32>
    %292 = tpu.matmul %287, %286, %cst_86 {dimension_numbers = #tpu.dot_dimension_numbers<[1], [0], [0], [1], [0, 0, 1, 1], [], []>} : vector<2x32xf32>, vector<32x128xf32>, vector<2x128xf32> -> vector<2x128xf32>
    %293 = arith.addf %291, %292 : vector<2x128xf32>
    %294 = vector.extract_strided_slice %293 {offsets = [0, 0], sizes = [2, 32], strides = [1, 1]} : vector<2x128xf32> to vector<2x32xf32>
    %295 = arith.negf %294 : vector<2x32xf32>
    %296 = math.exp %295 : vector<2x32xf32>
    %cst_87 = arith.constant 1.000000e+00 : f32
    %297 = vector.broadcast %cst_87 : f32 to vector<2x32xf32>
    %298 = arith.addf %297, %296 : vector<2x32xf32>
    %299 = arith.divf %297, %298 : vector<2x32xf32>
    %300 = vector.extract_strided_slice %293 {offsets = [0, 32], sizes = [2, 32], strides = [1, 1]} : vector<2x128xf32> to vector<2x32xf32>
    %301 = arith.negf %300 : vector<2x32xf32>
    %302 = math.exp %301 : vector<2x32xf32>
    %cst_88 = arith.constant 1.000000e+00 : f32
    %303 = vector.broadcast %cst_88 : f32 to vector<2x32xf32>
    %304 = arith.addf %303, %302 : vector<2x32xf32>
    %305 = arith.divf %303, %304 : vector<2x32xf32>
    %306 = vector.extract_strided_slice %293 {offsets = [0, 64], sizes = [2, 32], strides = [1, 1]} : vector<2x128xf32> to vector<2x32xf32>
    %307 = math.tanh %306 : vector<2x32xf32>
    %308 = vector.extract_strided_slice %293 {offsets = [0, 96], sizes = [2, 32], strides = [1, 1]} : vector<2x128xf32> to vector<2x32xf32>
    %309 = arith.negf %308 : vector<2x32xf32>
    %310 = math.exp %309 : vector<2x32xf32>
    %cst_89 = arith.constant 1.000000e+00 : f32
    %311 = vector.broadcast %cst_89 : f32 to vector<2x32xf32>
    %312 = arith.addf %311, %310 : vector<2x32xf32>
    %313 = arith.divf %311, %312 : vector<2x32xf32>
    %314 = arith.mulf %305, %287 : vector<2x32xf32>
    %315 = arith.mulf %299, %307 : vector<2x32xf32>
    %316 = arith.addf %314, %315 : vector<2x32xf32>
    %317 = math.tanh %316 : vector<2x32xf32>
    %318 = arith.mulf %313, %317 : vector<2x32xf32>
    %319 = arith.index_cast %289 : i32 to index
    %c0_90 = arith.constant 0 : index
    %320 = vector.load %arg8[%319, %c0_90] : memref<16x32xf32, #tpu.memory_space<vmem>>, vector<2x32xf32>
    tpu.vector_store %arg8[%319, %c0_90], %318 {strides = array<i32>} : memref<16x32xf32, #tpu.memory_space<vmem>>, vector<2x32xf32>,
    %c1_i32_91 = arith.constant 1 : i32
    %c2_i32_92 = arith.constant 2 : i32
    %321 = arith.muli %c1_i32_91, %c2_i32_92 : i32
    %322 = tpu.assume_multiple %321, 2 : i32
    %323 = arith.index_cast %322 : i32 to index
    %c0_93 = arith.constant 0 : index
    %324 = vector.load %arg9[%323, %c0_93] : memref<16x128xf32, #tpu.memory_space<vmem>>, vector<2x128xf32>
    %cst_94 = arith.constant dense<0.000000e+00> : vector<2x128xf32>
    %325 = tpu.matmul %318, %286, %cst_94 {dimension_numbers = #tpu.dot_dimension_numbers<[1], [0], [0], [1], [0, 0, 1, 1], [], []>} : vector<2x32xf32>, vector<32x128xf32>, vector<2x128xf32> -> vector<2x128xf32>
    %326 = arith.addf %324, %325 : vector<2x128xf32>
    %327 = vector.extract_strided_slice %326 {offsets = [0, 0], sizes = [2, 32], strides = [1, 1]} : vector<2x128xf32> to vector<2x32xf32>
    %328 = arith.negf %327 : vector<2x32xf32>
    %329 = math.exp %328 : vector<2x32xf32>
    %cst_95 = arith.constant 1.000000e+00 : f32
    %330 = vector.broadcast %cst_95 : f32 to vector<2x32xf32>
    %331 = arith.addf %330, %329 : vector<2x32xf32>
    %332 = arith.divf %330, %331 : vector<2x32xf32>
    %333 = vector.extract_strided_slice %326 {offsets = [0, 32], sizes = [2, 32], strides = [1, 1]} : vector<2x128xf32> to vector<2x32xf32>
    %334 = arith.negf %333 : vector<2x32xf32>
    %335 = math.exp %334 : vector<2x32xf32>
    %cst_96 = arith.constant 1.000000e+00 : f32
    %336 = vector.broadcast %cst_96 : f32 to vector<2x32xf32>
    %337 = arith.addf %336, %335 : vector<2x32xf32>
    %338 = arith.divf %336, %337 : vector<2x32xf32>
    %339 = vector.extract_strided_slice %326 {offsets = [0, 64], sizes = [2, 32], strides = [1, 1]} : vector<2x128xf32> to vector<2x32xf32>
    %340 = math.tanh %339 : vector<2x32xf32>
    %341 = vector.extract_strided_slice %326 {offsets = [0, 96], sizes = [2, 32], strides = [1, 1]} : vector<2x128xf32> to vector<2x32xf32>
    %342 = arith.negf %341 : vector<2x32xf32>
    %343 = math.exp %342 : vector<2x32xf32>
    %cst_97 = arith.constant 1.000000e+00 : f32
    %344 = vector.broadcast %cst_97 : f32 to vector<2x32xf32>
    %345 = arith.addf %344, %343 : vector<2x32xf32>
    %346 = arith.divf %344, %345 : vector<2x32xf32>
    %347 = arith.mulf %338, %316 : vector<2x32xf32>
    %348 = arith.mulf %332, %340 : vector<2x32xf32>
    %349 = arith.addf %347, %348 : vector<2x32xf32>
    %350 = math.tanh %349 : vector<2x32xf32>
    %351 = arith.mulf %346, %350 : vector<2x32xf32>
    %352 = arith.index_cast %322 : i32 to index
    %c0_98 = arith.constant 0 : index
    %353 = vector.load %arg8[%352, %c0_98] : memref<16x32xf32, #tpu.memory_space<vmem>>, vector<2x32xf32>
    tpu.vector_store %arg8[%352, %c0_98], %351 {strides = array<i32>} : memref<16x32xf32, #tpu.memory_space<vmem>>, vector<2x32xf32>,
    %c2_i32_99 = arith.constant 2 : i32
    %c2_i32_100 = arith.constant 2 : i32
    %354 = arith.muli %c2_i32_99, %c2_i32_100 : i32
    %355 = tpu.assume_multiple %354, 2 : i32
    %356 = arith.index_cast %355 : i32 to index
    %c0_101 = arith.constant 0 : index
    %357 = vector.load %arg9[%356, %c0_101] : memref<16x128xf32, #tpu.memory_space<vmem>>, vector<2x128xf32>
    %cst_102 = arith.constant dense<0.000000e+00> : vector<2x128xf32>
    %358 = tpu.matmul %351, %286, %cst_102 {dimension_numbers = #tpu.dot_dimension_numbers<[1], [0], [0], [1], [0, 0, 1, 1], [], []>} : vector<2x32xf32>, vector<32x128xf32>, vector<2x128xf32> -> vector<2x128xf32>
    %359 = arith.addf %357, %358 : vector<2x128xf32>
    %360 = vector.extract_strided_slice %359 {offsets = [0, 0], sizes = [2, 32], strides = [1, 1]} : vector<2x128xf32> to vector<2x32xf32>
    %361 = arith.negf %360 : vector<2x32xf32>
    %362 = math.exp %361 : vector<2x32xf32>
    %cst_103 = arith.constant 1.000000e+00 : f32
    %363 = vector.broadcast %cst_103 : f32 to vector<2x32xf32>
    %364 = arith.addf %363, %362 : vector<2x32xf32>
    %365 = arith.divf %363, %364 : vector<2x32xf32>
    %366 = vector.extract_strided_slice %359 {offsets = [0, 32], sizes = [2, 32], strides = [1, 1]} : vector<2x128xf32> to vector<2x32xf32>
    %367 = arith.negf %366 : vector<2x32xf32>
    %368 = math.exp %367 : vector<2x32xf32>
    %cst_104 = arith.constant 1.000000e+00 : f32
    %369 = vector.broadcast %cst_104 : f32 to vector<2x32xf32>
    %370 = arith.addf %369, %368 : vector<2x32xf32>
    %371 = arith.divf %369, %370 : vector<2x32xf32>
    %372 = vector.extract_strided_slice %359 {offsets = [0, 64], sizes = [2, 32], strides = [1, 1]} : vector<2x128xf32> to vector<2x32xf32>
    %373 = math.tanh %372 : vector<2x32xf32>
    %374 = vector.extract_strided_slice %359 {offsets = [0, 96], sizes = [2, 32], strides = [1, 1]} : vector<2x128xf32> to vector<2x32xf32>
    %375 = arith.negf %374 : vector<2x32xf32>
    %376 = math.exp %375 : vector<2x32xf32>
    %cst_105 = arith.constant 1.000000e+00 : f32
    %377 = vector.broadcast %cst_105 : f32 to vector<2x32xf32>
    %378 = arith.addf %377, %376 : vector<2x32xf32>
    %379 = arith.divf %377, %378 : vector<2x32xf32>
    %380 = arith.mulf %371, %349 : vector<2x32xf32>
    %381 = arith.mulf %365, %373 : vector<2x32xf32>
    %382 = arith.addf %380, %381 : vector<2x32xf32>
    %383 = math.tanh %382 : vector<2x32xf32>
    %384 = arith.mulf %379, %383 : vector<2x32xf32>
    %385 = arith.index_cast %355 : i32 to index
    %c0_106 = arith.constant 0 : index
    %386 = vector.load %arg8[%385, %c0_106] : memref<16x32xf32, #tpu.memory_space<vmem>>, vector<2x32xf32>
    tpu.vector_store %arg8[%385, %c0_106], %384 {strides = array<i32>} : memref<16x32xf32, #tpu.memory_space<vmem>>, vector<2x32xf32>,
    %c3_i32_107 = arith.constant 3 : i32
    %c2_i32_108 = arith.constant 2 : i32
    %387 = arith.muli %c3_i32_107, %c2_i32_108 : i32
    %388 = tpu.assume_multiple %387, 2 : i32
    %389 = arith.index_cast %388 : i32 to index
    %c0_109 = arith.constant 0 : index
    %390 = vector.load %arg9[%389, %c0_109] : memref<16x128xf32, #tpu.memory_space<vmem>>, vector<2x128xf32>
    %cst_110 = arith.constant dense<0.000000e+00> : vector<2x128xf32>
    %391 = tpu.matmul %384, %286, %cst_110 {dimension_numbers = #tpu.dot_dimension_numbers<[1], [0], [0], [1], [0, 0, 1, 1], [], []>} : vector<2x32xf32>, vector<32x128xf32>, vector<2x128xf32> -> vector<2x128xf32>
    %392 = arith.addf %390, %391 : vector<2x128xf32>
    %393 = vector.extract_strided_slice %392 {offsets = [0, 0], sizes = [2, 32], strides = [1, 1]} : vector<2x128xf32> to vector<2x32xf32>
    %394 = arith.negf %393 : vector<2x32xf32>
    %395 = math.exp %394 : vector<2x32xf32>
    %cst_111 = arith.constant 1.000000e+00 : f32
    %396 = vector.broadcast %cst_111 : f32 to vector<2x32xf32>
    %397 = arith.addf %396, %395 : vector<2x32xf32>
    %398 = arith.divf %396, %397 : vector<2x32xf32>
    %399 = vector.extract_strided_slice %392 {offsets = [0, 32], sizes = [2, 32], strides = [1, 1]} : vector<2x128xf32> to vector<2x32xf32>
    %400 = arith.negf %399 : vector<2x32xf32>
    %401 = math.exp %400 : vector<2x32xf32>
    %cst_112 = arith.constant 1.000000e+00 : f32
    %402 = vector.broadcast %cst_112 : f32 to vector<2x32xf32>
    %403 = arith.addf %402, %401 : vector<2x32xf32>
    %404 = arith.divf %402, %403 : vector<2x32xf32>
    %405 = vector.extract_strided_slice %392 {offsets = [0, 64], sizes = [2, 32], strides = [1, 1]} : vector<2x128xf32> to vector<2x32xf32>
    %406 = math.tanh %405 : vector<2x32xf32>
    %407 = vector.extract_strided_slice %392 {offsets = [0, 96], sizes = [2, 32], strides = [1, 1]} : vector<2x128xf32> to vector<2x32xf32>
    %408 = arith.negf %407 : vector<2x32xf32>
    %409 = math.exp %408 : vector<2x32xf32>
    %cst_113 = arith.constant 1.000000e+00 : f32
    %410 = vector.broadcast %cst_113 : f32 to vector<2x32xf32>
    %411 = arith.addf %410, %409 : vector<2x32xf32>
    %412 = arith.divf %410, %411 : vector<2x32xf32>
    %413 = arith.mulf %404, %382 : vector<2x32xf32>
    %414 = arith.mulf %398, %406 : vector<2x32xf32>
    %415 = arith.addf %413, %414 : vector<2x32xf32>
    %416 = math.tanh %415 : vector<2x32xf32>
    %417 = arith.mulf %412, %416 : vector<2x32xf32>
    %418 = arith.index_cast %388 : i32 to index
    %c0_114 = arith.constant 0 : index
    %419 = vector.load %arg8[%418, %c0_114] : memref<16x32xf32, #tpu.memory_space<vmem>>, vector<2x32xf32>
    tpu.vector_store %arg8[%418, %c0_114], %417 {strides = array<i32>} : memref<16x32xf32, #tpu.memory_space<vmem>>, vector<2x32xf32>,
    %c4_i32_115 = arith.constant 4 : i32
    %c2_i32_116 = arith.constant 2 : i32
    %420 = arith.muli %c4_i32_115, %c2_i32_116 : i32
    %421 = tpu.assume_multiple %420, 2 : i32
    %422 = arith.index_cast %421 : i32 to index
    %c0_117 = arith.constant 0 : index
    %423 = vector.load %arg9[%422, %c0_117] : memref<16x128xf32, #tpu.memory_space<vmem>>, vector<2x128xf32>
    %cst_118 = arith.constant dense<0.000000e+00> : vector<2x128xf32>
    %424 = tpu.matmul %417, %286, %cst_118 {dimension_numbers = #tpu.dot_dimension_numbers<[1], [0], [0], [1], [0, 0, 1, 1], [], []>} : vector<2x32xf32>, vector<32x128xf32>, vector<2x128xf32> -> vector<2x128xf32>
    %425 = arith.addf %423, %424 : vector<2x128xf32>
    %426 = vector.extract_strided_slice %425 {offsets = [0, 0], sizes = [2, 32], strides = [1, 1]} : vector<2x128xf32> to vector<2x32xf32>
    %427 = arith.negf %426 : vector<2x32xf32>
    %428 = math.exp %427 : vector<2x32xf32>
    %cst_119 = arith.constant 1.000000e+00 : f32
    %429 = vector.broadcast %cst_119 : f32 to vector<2x32xf32>
    %430 = arith.addf %429, %428 : vector<2x32xf32>
    %431 = arith.divf %429, %430 : vector<2x32xf32>
    %432 = vector.extract_strided_slice %425 {offsets = [0, 32], sizes = [2, 32], strides = [1, 1]} : vector<2x128xf32> to vector<2x32xf32>
    %433 = arith.negf %432 : vector<2x32xf32>
    %434 = math.exp %433 : vector<2x32xf32>
    %cst_120 = arith.constant 1.000000e+00 : f32
    %435 = vector.broadcast %cst_120 : f32 to vector<2x32xf32>
    %436 = arith.addf %435, %434 : vector<2x32xf32>
    %437 = arith.divf %435, %436 : vector<2x32xf32>
    %438 = vector.extract_strided_slice %425 {offsets = [0, 64], sizes = [2, 32], strides = [1, 1]} : vector<2x128xf32> to vector<2x32xf32>
    %439 = math.tanh %438 : vector<2x32xf32>
    %440 = vector.extract_strided_slice %425 {offsets = [0, 96], sizes = [2, 32], strides = [1, 1]} : vector<2x128xf32> to vector<2x32xf32>
    %441 = arith.negf %440 : vector<2x32xf32>
    %442 = math.exp %441 : vector<2x32xf32>
    %cst_121 = arith.constant 1.000000e+00 : f32
    %443 = vector.broadcast %cst_121 : f32 to vector<2x32xf32>
    %444 = arith.addf %443, %442 : vector<2x32xf32>
    %445 = arith.divf %443, %444 : vector<2x32xf32>
    %446 = arith.mulf %437, %415 : vector<2x32xf32>
    %447 = arith.mulf %431, %439 : vector<2x32xf32>
    %448 = arith.addf %446, %447 : vector<2x32xf32>
    %449 = math.tanh %448 : vector<2x32xf32>
    %450 = arith.mulf %445, %449 : vector<2x32xf32>
    %451 = arith.index_cast %421 : i32 to index
    %c0_122 = arith.constant 0 : index
    %452 = vector.load %arg8[%451, %c0_122] : memref<16x32xf32, #tpu.memory_space<vmem>>, vector<2x32xf32>
    tpu.vector_store %arg8[%451, %c0_122], %450 {strides = array<i32>} : memref<16x32xf32, #tpu.memory_space<vmem>>, vector<2x32xf32>,
    %c5_i32_123 = arith.constant 5 : i32
    %c2_i32_124 = arith.constant 2 : i32
    %453 = arith.muli %c5_i32_123, %c2_i32_124 : i32
    %454 = tpu.assume_multiple %453, 2 : i32
    %455 = arith.index_cast %454 : i32 to index
    %c0_125 = arith.constant 0 : index
    %456 = vector.load %arg9[%455, %c0_125] : memref<16x128xf32, #tpu.memory_space<vmem>>, vector<2x128xf32>
    %cst_126 = arith.constant dense<0.000000e+00> : vector<2x128xf32>
    %457 = tpu.matmul %450, %286, %cst_126 {dimension_numbers = #tpu.dot_dimension_numbers<[1], [0], [0], [1], [0, 0, 1, 1], [], []>} : vector<2x32xf32>, vector<32x128xf32>, vector<2x128xf32> -> vector<2x128xf32>
    %458 = arith.addf %456, %457 : vector<2x128xf32>
    %459 = vector.extract_strided_slice %458 {offsets = [0, 0], sizes = [2, 32], strides = [1, 1]} : vector<2x128xf32> to vector<2x32xf32>
    %460 = arith.negf %459 : vector<2x32xf32>
    %461 = math.exp %460 : vector<2x32xf32>
    %cst_127 = arith.constant 1.000000e+00 : f32
    %462 = vector.broadcast %cst_127 : f32 to vector<2x32xf32>
    %463 = arith.addf %462, %461 : vector<2x32xf32>
    %464 = arith.divf %462, %463 : vector<2x32xf32>
    %465 = vector.extract_strided_slice %458 {offsets = [0, 32], sizes = [2, 32], strides = [1, 1]} : vector<2x128xf32> to vector<2x32xf32>
    %466 = arith.negf %465 : vector<2x32xf32>
    %467 = math.exp %466 : vector<2x32xf32>
    %cst_128 = arith.constant 1.000000e+00 : f32
    %468 = vector.broadcast %cst_128 : f32 to vector<2x32xf32>
    %469 = arith.addf %468, %467 : vector<2x32xf32>
    %470 = arith.divf %468, %469 : vector<2x32xf32>
    %471 = vector.extract_strided_slice %458 {offsets = [0, 64], sizes = [2, 32], strides = [1, 1]} : vector<2x128xf32> to vector<2x32xf32>
    %472 = math.tanh %471 : vector<2x32xf32>
    %473 = vector.extract_strided_slice %458 {offsets = [0, 96], sizes = [2, 32], strides = [1, 1]} : vector<2x128xf32> to vector<2x32xf32>
    %474 = arith.negf %473 : vector<2x32xf32>
    %475 = math.exp %474 : vector<2x32xf32>
    %cst_129 = arith.constant 1.000000e+00 : f32
    %476 = vector.broadcast %cst_129 : f32 to vector<2x32xf32>
    %477 = arith.addf %476, %475 : vector<2x32xf32>
    %478 = arith.divf %476, %477 : vector<2x32xf32>
    %479 = arith.mulf %470, %448 : vector<2x32xf32>
    %480 = arith.mulf %464, %472 : vector<2x32xf32>
    %481 = arith.addf %479, %480 : vector<2x32xf32>
    %482 = math.tanh %481 : vector<2x32xf32>
    %483 = arith.mulf %478, %482 : vector<2x32xf32>
    %484 = arith.index_cast %454 : i32 to index
    %c0_130 = arith.constant 0 : index
    %485 = vector.load %arg8[%484, %c0_130] : memref<16x32xf32, #tpu.memory_space<vmem>>, vector<2x32xf32>
    tpu.vector_store %arg8[%484, %c0_130], %483 {strides = array<i32>} : memref<16x32xf32, #tpu.memory_space<vmem>>, vector<2x32xf32>,
    %c6_i32_131 = arith.constant 6 : i32
    %c2_i32_132 = arith.constant 2 : i32
    %486 = arith.muli %c6_i32_131, %c2_i32_132 : i32
    %487 = tpu.assume_multiple %486, 2 : i32
    %488 = arith.index_cast %487 : i32 to index
    %c0_133 = arith.constant 0 : index
    %489 = vector.load %arg9[%488, %c0_133] : memref<16x128xf32, #tpu.memory_space<vmem>>, vector<2x128xf32>
    %cst_134 = arith.constant dense<0.000000e+00> : vector<2x128xf32>
    %490 = tpu.matmul %483, %286, %cst_134 {dimension_numbers = #tpu.dot_dimension_numbers<[1], [0], [0], [1], [0, 0, 1, 1], [], []>} : vector<2x32xf32>, vector<32x128xf32>, vector<2x128xf32> -> vector<2x128xf32>
    %491 = arith.addf %489, %490 : vector<2x128xf32>
    %492 = vector.extract_strided_slice %491 {offsets = [0, 0], sizes = [2, 32], strides = [1, 1]} : vector<2x128xf32> to vector<2x32xf32>
    %493 = arith.negf %492 : vector<2x32xf32>
    %494 = math.exp %493 : vector<2x32xf32>
    %cst_135 = arith.constant 1.000000e+00 : f32
    %495 = vector.broadcast %cst_135 : f32 to vector<2x32xf32>
    %496 = arith.addf %495, %494 : vector<2x32xf32>
    %497 = arith.divf %495, %496 : vector<2x32xf32>
    %498 = vector.extract_strided_slice %491 {offsets = [0, 32], sizes = [2, 32], strides = [1, 1]} : vector<2x128xf32> to vector<2x32xf32>
    %499 = arith.negf %498 : vector<2x32xf32>
    %500 = math.exp %499 : vector<2x32xf32>
    %cst_136 = arith.constant 1.000000e+00 : f32
    %501 = vector.broadcast %cst_136 : f32 to vector<2x32xf32>
    %502 = arith.addf %501, %500 : vector<2x32xf32>
    %503 = arith.divf %501, %502 : vector<2x32xf32>
    %504 = vector.extract_strided_slice %491 {offsets = [0, 64], sizes = [2, 32], strides = [1, 1]} : vector<2x128xf32> to vector<2x32xf32>
    %505 = math.tanh %504 : vector<2x32xf32>
    %506 = vector.extract_strided_slice %491 {offsets = [0, 96], sizes = [2, 32], strides = [1, 1]} : vector<2x128xf32> to vector<2x32xf32>
    %507 = arith.negf %506 : vector<2x32xf32>
    %508 = math.exp %507 : vector<2x32xf32>
    %cst_137 = arith.constant 1.000000e+00 : f32
    %509 = vector.broadcast %cst_137 : f32 to vector<2x32xf32>
    %510 = arith.addf %509, %508 : vector<2x32xf32>
    %511 = arith.divf %509, %510 : vector<2x32xf32>
    %512 = arith.mulf %503, %481 : vector<2x32xf32>
    %513 = arith.mulf %497, %505 : vector<2x32xf32>
    %514 = arith.addf %512, %513 : vector<2x32xf32>
    %515 = math.tanh %514 : vector<2x32xf32>
    %516 = arith.mulf %511, %515 : vector<2x32xf32>
    %517 = arith.index_cast %487 : i32 to index
    %c0_138 = arith.constant 0 : index
    %518 = vector.load %arg8[%517, %c0_138] : memref<16x32xf32, #tpu.memory_space<vmem>>, vector<2x32xf32>
    tpu.vector_store %arg8[%517, %c0_138], %516 {strides = array<i32>} : memref<16x32xf32, #tpu.memory_space<vmem>>, vector<2x32xf32>,
    %c7_i32_139 = arith.constant 7 : i32
    %c2_i32_140 = arith.constant 2 : i32
    %519 = arith.muli %c7_i32_139, %c2_i32_140 : i32
    %520 = tpu.assume_multiple %519, 2 : i32
    %521 = arith.index_cast %520 : i32 to index
    %c0_141 = arith.constant 0 : index
    %522 = vector.load %arg9[%521, %c0_141] : memref<16x128xf32, #tpu.memory_space<vmem>>, vector<2x128xf32>
    %cst_142 = arith.constant dense<0.000000e+00> : vector<2x128xf32>
    %523 = tpu.matmul %516, %286, %cst_142 {dimension_numbers = #tpu.dot_dimension_numbers<[1], [0], [0], [1], [0, 0, 1, 1], [], []>} : vector<2x32xf32>, vector<32x128xf32>, vector<2x128xf32> -> vector<2x128xf32>
    %524 = arith.addf %522, %523 : vector<2x128xf32>
    %525 = vector.extract_strided_slice %524 {offsets = [0, 0], sizes = [2, 32], strides = [1, 1]} : vector<2x128xf32> to vector<2x32xf32>
    %526 = arith.negf %525 : vector<2x32xf32>
    %527 = math.exp %526 : vector<2x32xf32>
    %cst_143 = arith.constant 1.000000e+00 : f32
    %528 = vector.broadcast %cst_143 : f32 to vector<2x32xf32>
    %529 = arith.addf %528, %527 : vector<2x32xf32>
    %530 = arith.divf %528, %529 : vector<2x32xf32>
    %531 = vector.extract_strided_slice %524 {offsets = [0, 32], sizes = [2, 32], strides = [1, 1]} : vector<2x128xf32> to vector<2x32xf32>
    %532 = arith.negf %531 : vector<2x32xf32>
    %533 = math.exp %532 : vector<2x32xf32>
    %cst_144 = arith.constant 1.000000e+00 : f32
    %534 = vector.broadcast %cst_144 : f32 to vector<2x32xf32>
    %535 = arith.addf %534, %533 : vector<2x32xf32>
    %536 = arith.divf %534, %535 : vector<2x32xf32>
    %537 = vector.extract_strided_slice %524 {offsets = [0, 64], sizes = [2, 32], strides = [1, 1]} : vector<2x128xf32> to vector<2x32xf32>
    %538 = math.tanh %537 : vector<2x32xf32>
    %539 = vector.extract_strided_slice %524 {offsets = [0, 96], sizes = [2, 32], strides = [1, 1]} : vector<2x128xf32> to vector<2x32xf32>
    %540 = arith.negf %539 : vector<2x32xf32>
    %541 = math.exp %540 : vector<2x32xf32>
    %cst_145 = arith.constant 1.000000e+00 : f32
    %542 = vector.broadcast %cst_145 : f32 to vector<2x32xf32>
    %543 = arith.addf %542, %541 : vector<2x32xf32>
    %544 = arith.divf %542, %543 : vector<2x32xf32>
    %545 = arith.mulf %536, %514 : vector<2x32xf32>
    %546 = arith.mulf %530, %538 : vector<2x32xf32>
    %547 = arith.addf %545, %546 : vector<2x32xf32>
    %548 = math.tanh %547 : vector<2x32xf32>
    %549 = arith.mulf %544, %548 : vector<2x32xf32>
    %550 = arith.index_cast %520 : i32 to index
    %c0_146 = arith.constant 0 : index
    %551 = vector.load %arg8[%550, %c0_146] : memref<16x32xf32, #tpu.memory_space<vmem>>, vector<2x32xf32>
    tpu.vector_store %arg8[%550, %c0_146], %549 {strides = array<i32>} : memref<16x32xf32, #tpu.memory_space<vmem>>, vector<2x32xf32>,
    %c8_i32_147 = arith.constant 8 : i32
    %c0_148 = arith.constant 0 : index
    %c0_149 = arith.constant 0 : index
    %552 = vector.load %arg8[%c0_148, %c0_149] : memref<16x32xf32, #tpu.memory_space<vmem>>, vector<16x32xf32>
    %c0_150 = arith.constant 0 : index
    %c0_151 = arith.constant 0 : index
    %553 = vector.load %arg5[%c0_150, %c0_151] : memref<32x16xf32, #tpu.memory_space<vmem>>, vector<32x16xf32>
    %cst_152 = arith.constant dense<0.000000e+00> : vector<16x16xf32>
    %554 = tpu.matmul %552, %553, %cst_152 {dimension_numbers = #tpu.dot_dimension_numbers<[1], [0], [0], [1], [0, 0, 1, 1], [], []>} : vector<16x32xf32>, vector<32x16xf32>, vector<16x16xf32> -> vector<16x16xf32>
    %c0_153 = arith.constant 0 : index
    %c0_154 = arith.constant 0 : index
    %555 = vector.load %arg6[%c0_153, %c0_154] : memref<1x16xf32, #tpu.memory_space<vmem>>, vector<1x16xf32>
    %556 = vector.broadcast %555 : vector<1x16xf32> to vector<16x16xf32>
    %557 = arith.addf %554, %556 : vector<16x16xf32>
    %c0_155 = arith.constant 0 : index
    %c0_156 = arith.constant 0 : index
    %558 = vector.load %arg7[%c0_155, %c0_156] : memref<16x16xf32, #tpu.memory_space<vmem>>, vector<16x16xf32>
    tpu.vector_store %arg7[%c0_155, %c0_156], %557 {strides = array<i32>} : memref<16x16xf32, #tpu.memory_space<vmem>>, vector<16x16xf32>,
    return
  }
  func.func @transform_0(%arg0: i32) -> (i32, i32) {
    %c0_i32 = arith.constant 0 : i32
    %c0_i32_0 = arith.constant 0 : i32
    %c0_i32_1 = arith.constant 0 : i32
    return %c0_i32, %c0_i32_0 : i32, i32
  }
  func.func @transform_1(%arg0: i32) -> (i32, i32, i32) {
    %c0_i32 = arith.constant 0 : i32
    %c0_i32_0 = arith.constant 0 : i32
    %c0_i32_1 = arith.constant 0 : i32
    %c0_i32_2 = arith.constant 0 : i32
    return %c0_i32, %c0_i32_0, %c0_i32_1 : i32, i32, i32
  }
  func.func @transform_2(%arg0: i32) -> (i32, i32, i32) {
    %c0_i32 = arith.constant 0 : i32
    %c0_i32_0 = arith.constant 0 : i32
    %c0_i32_1 = arith.constant 0 : i32
    %c0_i32_2 = arith.constant 0 : i32
    return %c0_i32, %c0_i32_0, %c0_i32_1 : i32, i32, i32
  }
  func.func @transform_3(%arg0: i32) -> (i32, i32, i32) {
    %c0_i32 = arith.constant 0 : i32
    %c0_i32_0 = arith.constant 0 : i32
    %c0_i32_1 = arith.constant 0 : i32
    %c0_i32_2 = arith.constant 0 : i32
    return %c0_i32, %c0_i32_0, %c0_i32_1 : i32, i32, i32
  }
  func.func @transform_4(%arg0: i32) -> (i32, i32) {
    %c0_i32 = arith.constant 0 : i32
    %c0_i32_0 = arith.constant 0 : i32
    %c0_i32_1 = arith.constant 0 : i32
    return %c0_i32, %c0_i32_0 : i32, i32
  }
  func.func @transform_5(%arg0: i32) -> (i32, i32) {
    %c0_i32 = arith.constant 0 : i32
    %c0_i32_0 = arith.constant 0 : i32
    %c0_i32_1 = arith.constant 0 : i32
    return %c0_i32, %c0_i32_0 : i32, i32
  }
  func.func @transform_6(%arg0: i32) -> (i32, i32) {
    %c0_i32 = arith.constant 0 : i32
    %c0_i32_0 = arith.constant 0 : i32
    %c0_i32_1 = arith.constant 0 : i32
    return %c0_i32, %c0_i32_0 : i32, i32
  }
}

</mosaic_0001>

<bundles_post_ra>
// kernel: tpu_custom_call.1
= control target key start
LH: loop header
LB: loop body
LE: loop exit
PB: predicated region body
PF: predicated region fallthrough
CT: control target
= control target key end

     0   :  { %11 = vsyncpa [#allocation5], 0  ;;  %s3033_s0 = inlined_call_operand.vmem [shape: f32[16,32], index: 0, kind: input, shape index: {}]   ;;  %s3034_s1 = inlined_call_operand.hbm [shape: f32[2,32,128], index: 1, kind: input, shape index: {}]   ;;  %s3035_s2 = inlined_call_operand.hbm [shape: f32[2,32,128], index: 2, kind: input, shape index: {}]   ;;  %s3036_s3 = inlined_call_operand.vmem [shape: f32[2,1,128], index: 3, kind: input, shape index: {}]   ;;  %s3037_s4 = inlined_call_operand.vmem [shape: f32[32,16], index: 4, kind: input, shape index: {}]   ;;  %s3038_s5 = inlined_call_operand.vmem [shape: f32[1,16], index: 5, kind: input, shape index: {}]   ;;  %s3039_s6 = inlined_call_operand.hbm [shape: f32[16,16], index: 6, kind: output, shape index: {}]  }
   0x1   :  { %12 = vsyncpa [#allocation8], 0 }
   0x2   :  { %13 = vsyncpa [#allocation6], 0  ;;  %s2710_s21 = smov [#allocation4]   ;;  %s2638_s25 = scalar_lea.hbm %s3034_s1, 1024 }
   0x3   :  { %s21_s22 = sshll.u32 %s2710_s21, 4  ;;  %p2639_p0 = scmp.ne.s32.totalorder %s3034_s1, %s2638_s25  ;;  %s22_s22 = int_to_ptr.vmem [resolvable:$true] %s21_s22 }
   0x4   :  { %p2642_p1 = scmp.lt.u32.totalorder %s2638_s25, %s3034_s1 }
   0x6   :  { %p2644_p2 = pnand %p2642_p1, %p2639_p0 }
   0x8   :  { %2647 = shalt.err (!%p2644_p2)
}
   0x9   :  { %s2648_s30 = scalar_lea.vmem %s22_s22, 1024  ;;  %p2653_p4 = scmp.lt.s32.totalorder %s22_s22, %s22_s22 }
   0xa   :  { %p2649_p3 = scmp.ne.s32.totalorder %s22_s22, %s2648_s30  ;;  %p2654_p5 = scmp.lt.s32.totalorder %s2648_s30, %s2648_s30 }
   0xc   :  { %p2655_p6 = por %p2654_p5, %p2653_p4 }
   0xe   :  { %p2656_p7 = pnand %p2655_p6, %p2649_p3 }
  0x10   :  { %2659 = shalt.err (!%p2656_p7)
}
  0x11   :  { %s2711_s7 = smov 128   ;;  %s2712_s8 = smov 8  }
  0x12   :  { %27 = dma.hbm_to_vmem [thread:$0]  %s3034_s1, 1024, %s22_s22, [#allocation5], %s2711_s7, %s2711_s7, %s2712_s8  }
  0x13   :  { %s2713_s11 = smov [#allocation7]   ;;  %s2660_s15 = scalar_lea.hbm %s3035_s2, 1024 }
  0x14   :  { %s33_s12 = sshll.u32 %s2713_s11, 4  ;;  %p2661_p8 = scmp.ne.s32.totalorder %s3035_s2, %s2660_s15  ;;  %s34_s12 = int_to_ptr.vmem [resolvable:$true] %s33_s12 }
  0x15   :  { %p2664_p9 = scmp.lt.u32.totalorder %s2660_s15, %s3035_s2 }
  0x17   :  { %p2666_p10 = pnand %p2664_p9, %p2661_p8 }
  0x19   :  { %2669 = shalt.err (!%p2666_p10)
}
  0x1a   :  { %s2670_s20 = scalar_lea.vmem %s34_s12, 1024  ;;  %p2675_p12 = scmp.lt.s32.totalorder %s34_s12, %s34_s12 }
  0x1b   :  { %p2671_p11 = scmp.ne.s32.totalorder %s34_s12, %s2670_s20  ;;  %p2676_p13 = scmp.lt.s32.totalorder %s2670_s20, %s2670_s20 }
  0x1d   :  { %p2677_p0 = por %p2676_p13, %p2675_p12 }
  0x1f   :  { %p2678_p1 = pnand %p2677_p0, %p2671_p11 }
  0x21   :  { %2681 = shalt.err (!%p2678_p1)
}
  0x22   :  { %39 = dma.hbm_to_vmem [thread:$0]  %s3035_s2, 1024, %s34_s12, [#allocation8], %s2711_s7, %s2711_s7, %s2712_s8  }
  0x23   :  { %2704 = dma.done.wait [#allocation5], 1024  }
  0x24   :  { %2705 = vsyncadd [#allocation5], 4294966272 }
  0x25   :  { %2706 = dma.done.wait [#allocation8], 1024  }
  0x26   :  { %2707 = vsyncadd [#allocation8], 4294966272  ;;  %v2714_v0 = vmov 0.0|0.0   ;;  %vm2715_vm0 = vmmov 0   ;;  %v2716_v1 = vmov 0.0   ;;  %vm65_vm1 = vcmask 261120  }
  0x27   :  { %2388 = vmatprep.subr.bf16.mxu1 %v2714_v0  ;;  %2190 = vmatprep.mubr.msk.f32.mxu1 %vm2715_vm0, %v2716_v1  ;;  %v54_v2 = vld [vmem:[#allocation4] sm:$0xff]  ;;  %v55_v3 = vld [vmem:[#allocation4 + $0x8] sm:$0xff]  ;;  %v56_v4 = vld [vmem:[#allocation4 + $0x10] sm:$0xff]  ;;  %s2717_s26 = smov 64   ;;  %s2718_s27 = smov 32   ;;  %vm256_vm2 = vcmask 254976  }
  0x28   :  { %v2380_v5 = vpack.c.bf16 %v55_v3, %v54_v2  ;;  %v57_v6 = vld [vmem:[#allocation4 + $0x18] sm:$0xff]  ;;  %v52_v7 = vld [vmem:[%s3033_s0] sm:$0xff]  ;;  %v150_v10 = vld [vmem:[#allocation7 + $0x8] sm:$0xff]  ;;  %vm2012_vm3 = vcmask 130048  }
  0x29   :  { %v2384_v8 = vpack.c.bf16 %v57_v6, %v56_v4  ;;  %2179 = vmatprep.mubr.msk.f32.mxu0 %vm65_vm1, %v52_v7  ;;  %v149_v9 = vld [vmem:[#allocation7] sm:$0xff]  ;;  %v151_v11 = vld [vmem:[#allocation7 + $0x10] sm:$0xff]  ;;  %v152_v13 = vld [vmem:[#allocation7 + $0x18] sm:$0xff] }
  0x2a   :  { %2381 = vmatprep.subr.bf16.mxu0 %v2380_v5  ;;  %v2792_v12 = vpack.c.bf16 %v150_v10, %v149_v9  ;;  %v2795_v14 = vpack.c.bf16 %v152_v13, %v151_v11  ;;  %v53_v15 = vld [vmem:[%s3033_s0 + $0x8] sm:$0xff]  ;;  %v2033_v16 = vld [vmem:[%s3036_s3] ss:$0 sm:$0xff] }
  0x2b   :  { %2383 = vmatpush3.bf16.msra.mxu0 %v2380_v5 }
  0x2c   :  { %2385 = vmatprep.subr.bf16.mxu0 %v2384_v8  ;;  %2390 = vmatpush3.bf16.msra.mxu1 %v2792_v12 }
  0x2d   :  { %2391 = vmatprep.subr.bf16.mxu1 %v2714_v0 }
  0x2f   :  { %2387 = vmatpush3.bf16.msra.mxu0 %v2384_v8 }
  0x30   :  { %2393 = vmatpush3.bf16.msra.mxu1 %v2795_v14  ;;  %2394 = vmatprep.subr.bf16.mxu0 %v2714_v0 }
  0x31   :  { %2400 = vmatprep.subr.bf16.mxu1 %v2714_v0 }
  0x32   :  { %2180 = vmatmul.mubr.msk.f32.vlgmr.msra.gmra.mrb[0].mxu0 %vm65_vm1, %v53_v15 }
  0x33   :  { %2191 = vmatmul.mubr.f32.vlgmr.msra.gmra.mrb[0].mxu1 %v2716_v1  ;;  %2396 = vmatpush3.bf16.msra.mxu0 %v2792_v12 }
  0x34   :  { %2397 = vmatprep.subr.bf16.mxu0 %v2714_v0  ;;  %2201 = vmatprep.mubr.msk.f32.mxu0 %vm2715_vm0, %v2716_v1 }
  0x35   :  { %2402 = vmatpush3.bf16.msra.mxu1 %v2792_v12  ;;  %2212 = vmatprep.mubr.msk.f32.mxu1 %vm2715_vm0, %v2716_v1 }
  0x36   :  { %2403 = vmatprep.subr.bf16.mxu1 %v2714_v0 }
  0x37   :  { %2399 = vmatpush3.bf16.msra.mxu0 %v2795_v14 }
  0x38   :  { %2406 = vmatprep.subr.bf16.mxu0 %v2714_v0 }
  0x39   :  { %2405 = vmatpush3.bf16.msra.mxu1 %v2795_v14 }
  0x3a   :  { %2412 = vmatprep.subr.bf16.mxu1 %v2714_v0 }
 0x105   :  { %v2181_v17 = vpop.f32.mrb[0].mxu0 }
 0x106   :  { %v144_v18 = vadd.f32 %v2181_v17, %v2033_v16  ;;  %v138_v19 = vpop.f32.mrb[1].mxu0  ;;  %v223_v20 = vpop.f32.mrb[0].mxu1 }
 0x107   :  { %v139_v21 = vadd.f32 %v2033_v16, %v138_v19  ;;  %v2192_v22 = vpop.f32.mrb[1].mxu1 }
 0x108   :  { %148 = vst [vmem:[#allocation3 + $0x8] sm:$0xff] %v144_v18 }
 0x109   :  { %147 = vst [vmem:[#allocation3] sm:$0xff] %v139_v21 }
 0x110   :  { %v153_v23 = vld [vmem:[#allocation3] sm:$0x3]  ;;  %v259_v39 = vld [vmem:[#allocation3 + $0x2] sm:$0x3]  ;;  %v364_v57 = vld [vmem:[#allocation3 + $0x4] sm:$0x3] }
 0x111   :  { %v227_v24 = vadd.f32 %v223_v20, %v153_v23  ;;  %v469_v15 = vld [vmem:[#allocation3 + $0x6] sm:$0x3] }
 0x113   :  { %2510 = vtanh.f32 %v227_v24  ;;  %v2036_v26 = vmul.f32 -1.442695, %v227_v24 }
 0x115   :  { %2512 = vpow2.f32 %v2036_v26 }
 0x11d   :  { %v2511_v25 = vpop.eup %2510 }
 0x11e   :  { %237 = vrot.lane.b32.xlu0 %v2511_v25, %s2717_s26 }
 0x11f   :  { %v2513_v27 = vpop.eup %2512 }
 0x120   :  { %v231_v28 = vadd.f32 1.0, %v2513_v27 }
 0x122   :  { %2514 = vrcp.f32 %v231_v28 }
 0x12c   :  { %v2515_v29 = vpop.eup %2514 }
 0x12d   :  { %v235_v32 = vmul.f32 0.0, %v2515_v29 }
 0x190   :  { %v238_v30 = vpop.permute.xlu0 %237 }
 0x191   :  { %v240_v31 = vmul.f32 %v2515_v29, %v238_v30 }
 0x193   :  { %242 = vrot.lane.b32.xlu0 %v240_v31, %s2718_s27 }
 0x205   :  { %v243_v33 = vpop.permute.xlu0 %242 }
 0x206   :  { %v245_v34 = vadd.f32 %v243_v33, %v235_v32  ;;  %v574_v33 = vld [vmem:[#allocation3 + $0x8] sm:$0x3] }
 0x208   :  { %2516 = vtanh.f32 %v245_v34 }
 0x212   :  { %v2517_v35 = vpop.eup %2516 }
 0x213   :  { %248 = vrot.lane.b32.xlu1 %v2517_v35, %s2717_s26 }
 0x285   :  { %v249_v36 = vpop.permute.xlu1 %248 }
 0x286   :  { %v251_v37 = vmul.f32 %v2515_v29, %v249_v36 }
 0x288   :  { %253 = vrot.lane.b32.xlu1 %v251_v37, %s2718_s27 }
 0x2fa   :  { %v254_v38 = vpop.permute.xlu1 %253 }
 0x2fb   :  { %257 = vst.msk [vmem:[#allocation2] sm:$0x3] %vm256_vm2, %v254_v38  ;;  %2202 = vmatmul.mubr.msk.f32.vlgmr.msra.gmra.mrb[2].mxu0 %vm65_vm1, %v254_v38 }
 0x2fc   :  { %2408 = vmatpush3.bf16.msra.mxu0 %v2792_v12  ;;  %2223 = vmatprep.mubr.msk.f32.mxu0 %vm2715_vm0, %v2716_v1 }
 0x2fd   :  { %2409 = vmatprep.subr.bf16.mxu0 %v2714_v0 }
 0x300   :  { %2411 = vmatpush3.bf16.msra.mxu0 %v2795_v14 }
 0x301   :  { %2418 = vmatprep.subr.bf16.mxu0 %v2714_v0 }
 0x3ce   :  { %v328_v40 = vpop.f32.mrb[2].mxu0 }
 0x3cf   :  { %v332_v41 = vadd.f32 %v328_v40, %v259_v39  ;;  %v2203_v42 = vpop.f32.mrb[3].mxu0 }
 0x3d1   :  { %2518 = vtanh.f32 %v332_v41  ;;  %v2038_v44 = vmul.f32 -1.442695, %v332_v41 }
 0x3d3   :  { %2520 = vpow2.f32 %v2038_v44 }
 0x3db   :  { %v2519_v43 = vpop.eup %2518 }
 0x3dc   :  { %342 = vrot.lane.b32.xlu0 %v2519_v43, %s2717_s26 }
 0x3dd   :  { %v2521_v45 = vpop.eup %2520 }
 0x3de   :  { %v336_v46 = vadd.f32 1.0, %v2521_v45 }
 0x3e0   :  { %2522 = vrcp.f32 %v336_v46 }
 0x3ea   :  { %v2523_v47 = vpop.eup %2522 }
 0x3eb   :  { %v340_v50 = vmul.f32 %v2523_v47, %v245_v34 }
 0x44e   :  { %v343_v48 = vpop.permute.xlu0 %342 }
 0x44f   :  { %v345_v49 = vmul.f32 %v2523_v47, %v343_v48 }
 0x451   :  { %347 = vrot.lane.b32.xlu1 %v345_v49, %s2718_s27 }
 0x4c3   :  { %v348_v51 = vpop.permute.xlu1 %347 }
 0x4c4   :  { %v350_v52 = vadd.f32 %v348_v51, %v340_v50  ;;  %v679_v51 = vld [vmem:[#allocation3 + $0xa] sm:$0x3] }
 0x4c6   :  { %2524 = vtanh.f32 %v350_v52 }
 0x4d0   :  { %v2525_v53 = vpop.eup %2524 }
 0x4d1   :  { %353 = vrot.lane.b32.xlu0 %v2525_v53, %s2717_s26 }
 0x543   :  { %v354_v54 = vpop.permute.xlu0 %353 }
 0x544   :  { %v356_v55 = vmul.f32 %v2523_v47, %v354_v54 }
 0x546   :  { %358 = vrot.lane.b32.xlu1 %v356_v55, %s2718_s27 }
 0x5b8   :  { %v359_v56 = vpop.permute.xlu1 %358 }
 0x5b9   :  { %362 = vst.msk [vmem:[#allocation2 + $0x2] sm:$0x3] %vm256_vm2, %v359_v56  ;;  %2213 = vmatmul.mubr.msk.f32.vlgmr.msra.gmra.mrb[2].mxu1 %vm65_vm1, %v359_v56 }
 0x5ba   :  { %2414 = vmatpush3.bf16.msra.mxu1 %v2792_v12  ;;  %2234 = vmatprep.mubr.msk.f32.mxu1 %vm2715_vm0, %v2716_v1 }
 0x5bb   :  { %2415 = vmatprep.subr.bf16.mxu1 %v2714_v0 }
 0x5be   :  { %2417 = vmatpush3.bf16.msra.mxu1 %v2795_v14 }
 0x5bf   :  { %2424 = vmatprep.subr.bf16.mxu1 %v2714_v0 }
 0x68c   :  { %v433_v58 = vpop.f32.mrb[2].mxu1 }
 0x68d   :  { %v437_v59 = vadd.f32 %v433_v58, %v364_v57  ;;  %v2214_v60 = vpop.f32.mrb[3].mxu1 }
 0x68f   :  { %2526 = vtanh.f32 %v437_v59  ;;  %v2040_v62 = vmul.f32 -1.442695, %v437_v59 }
 0x691   :  { %2528 = vpow2.f32 %v2040_v62 }
 0x699   :  { %v2527_v61 = vpop.eup %2526 }
 0x69a   :  { %447 = vrot.lane.b32.xlu0 %v2527_v61, %s2717_s26 }
 0x69b   :  { %v2529_v63 = vpop.eup %2528 }
 0x69c   :  { %v441_v2 = vadd.f32 1.0, %v2529_v63 }
 0x69e   :  { %2530 = vrcp.f32 %v441_v2 }
 0x6a8   :  { %v2531_v3 = vpop.eup %2530 }
 0x6a9   :  { %v445_v6 = vmul.f32 %v2531_v3, %v350_v52 }
 0x70c   :  { %v448_v4 = vpop.permute.xlu0 %447 }
 0x70d   :  { %v450_v5 = vmul.f32 %v2531_v3, %v448_v4 }
 0x70f   :  { %452 = vrot.lane.b32.xlu1 %v450_v5, %s2718_s27 }
 0x781   :  { %v453_v7 = vpop.permute.xlu1 %452 }
 0x782   :  { %v455_v8 = vadd.f32 %v453_v7, %v445_v6  ;;  %v784_v6 = vld [vmem:[#allocation3 + $0xc] sm:$0x3] }
 0x784   :  { %2532 = vtanh.f32 %v455_v8 }
 0x78e   :  { %v2533_v9 = vpop.eup %2532 }
 0x78f   :  { %458 = vrot.lane.b32.xlu0 %v2533_v9, %s2717_s26 }
 0x801   :  { %v459_v10 = vpop.permute.xlu0 %458 }
 0x802   :  { %v461_v11 = vmul.f32 %v2531_v3, %v459_v10 }
 0x804   :  { %463 = vrot.lane.b32.xlu1 %v461_v11, %s2718_s27 }
 0x876   :  { %v464_v13 = vpop.permute.xlu1 %463 }
 0x877   :  { %467 = vst.msk [vmem:[#allocation2 + $0x4] sm:$0x3] %vm256_vm2, %v464_v13  ;;  %2224 = vmatmul.mubr.msk.f32.vlgmr.msra.gmra.mrb[4].mxu0 %vm65_vm1, %v464_v13 }
 0x878   :  { %2420 = vmatpush3.bf16.msra.mxu0 %v2792_v12  ;;  %2245 = vmatprep.mubr.msk.f32.mxu0 %vm2715_vm0, %v2716_v1 }
 0x879   :  { %2421 = vmatprep.subr.bf16.mxu0 %v2714_v0 }
 0x87c   :  { %2423 = vmatpush3.bf16.msra.mxu0 %v2795_v14 }
 0x87d   :  { %2430 = vmatprep.subr.bf16.mxu0 %v2714_v0 }
 0x94a   :  { %v538_v16 = vpop.f32.mrb[4].mxu0 }
 0x94b   :  { %v542_v17 = vadd.f32 %v538_v16, %v469_v15  ;;  %v2225_v18 = vpop.f32.mrb[5].mxu0 }
 0x94d   :  { %2534 = vtanh.f32 %v542_v17  ;;  %v2042_v20 = vmul.f32 -1.442695, %v542_v17 }
 0x94f   :  { %2536 = vpow2.f32 %v2042_v20 }
 0x957   :  { %v2535_v19 = vpop.eup %2534 }
 0x958   :  { %552 = vrot.lane.b32.xlu0 %v2535_v19, %s2717_s26 }
 0x959   :  { %v2537_v21 = vpop.eup %2536 }
 0x95a   :  { %v546_v22 = vadd.f32 1.0, %v2537_v21 }
 0x95c   :  { %2538 = vrcp.f32 %v546_v22 }
 0x966   :  { %v2539_v23 = vpop.eup %2538 }
 0x967   :  { %v550_v26 = vmul.f32 %v2539_v23, %v455_v8 }
 0x9ca   :  { %v553_v24 = vpop.permute.xlu0 %552 }
 0x9cb   :  { %v555_v25 = vmul.f32 %v2539_v23, %v553_v24 }
 0x9cd   :  { %557 = vrot.lane.b32.xlu1 %v555_v25, %s2718_s27 }
 0xa3f   :  { %v558_v27 = vpop.permute.xlu1 %557 }
 0xa40   :  { %v560_v28 = vadd.f32 %v558_v27, %v550_v26  ;;  %v889_v26 = vld [vmem:[#allocation3 + $0xe] sm:$0x3] }
 0xa42   :  { %2540 = vtanh.f32 %v560_v28 }
 0xa4c   :  { %v2541_v29 = vpop.eup %2540 }
 0xa4d   :  { %563 = vrot.lane.b32.xlu0 %v2541_v29, %s2717_s26 }
 0xabf   :  { %v564_v30 = vpop.permute.xlu0 %563 }
 0xac0   :  { %v566_v31 = vmul.f32 %v2539_v23, %v564_v30 }
 0xac2   :  { %568 = vrot.lane.b32.xlu1 %v566_v31, %s2718_s27 }
 0xb34   :  { %v569_v32 = vpop.permute.xlu1 %568 }
 0xb35   :  { %572 = vst.msk [vmem:[#allocation2 + $0x6] sm:$0x3] %vm256_vm2, %v569_v32  ;;  %2235 = vmatmul.mubr.msk.f32.vlgmr.msra.gmra.mrb[4].mxu1 %vm65_vm1, %v569_v32 }
 0xb36   :  { %2426 = vmatpush3.bf16.msra.mxu1 %v2792_v12  ;;  %2256 = vmatprep.mubr.msk.f32.mxu1 %vm2715_vm0, %v2716_v1 }
 0xb37   :  { %2427 = vmatprep.subr.bf16.mxu1 %v2714_v0 }
 0xb3a   :  { %2429 = vmatpush3.bf16.msra.mxu1 %v2795_v14 }
 0xb3c   :  { %v993_v5 = vld [vmem:[#allocation2] sm:$0xff] }
 0xc08   :  { %v643_v34 = vpop.f32.mrb[4].mxu1 }
 0xc09   :  { %v647_v35 = vadd.f32 %v643_v34, %v574_v33  ;;  %v2236_v36 = vpop.f32.mrb[5].mxu1 }
 0xc0b   :  { %2542 = vtanh.f32 %v647_v35  ;;  %v2044_v38 = vmul.f32 -1.442695, %v647_v35 }
 0xc0d   :  { %2544 = vpow2.f32 %v2044_v38 }
 0xc15   :  { %v2543_v37 = vpop.eup %2542 }
 0xc16   :  { %657 = vrot.lane.b32.xlu0 %v2543_v37, %s2717_s26 }
 0xc17   :  { %v2545_v39 = vpop.eup %2544 }
 0xc18   :  { %v651_v40 = vadd.f32 1.0, %v2545_v39 }
 0xc1a   :  { %2546 = vrcp.f32 %v651_v40 }
 0xc24   :  { %v2547_v41 = vpop.eup %2546 }
 0xc25   :  { %v655_v44 = vmul.f32 %v2547_v41, %v560_v28 }
 0xc88   :  { %v658_v42 = vpop.permute.xlu0 %657 }
 0xc89   :  { %v660_v43 = vmul.f32 %v2547_v41, %v658_v42  ;;  %v997_v42 = vld [vmem:[#allocation4 + $0x28] sm:$0xff] }
 0xc8b   :  { %662 = vrot.lane.b32.xlu1 %v660_v43, %s2718_s27 }
 0xcfd   :  { %v663_v45 = vpop.permute.xlu1 %662 }
 0xcfe   :  { %v665_v46 = vadd.f32 %v663_v45, %v655_v44  ;;  %v998_v44 = vld [vmem:[#allocation4 + $0x30] sm:$0xff]  ;;  %v999_v45 = vld [vmem:[#allocation4 + $0x38] sm:$0xff] }
 0xd00   :  { %2548 = vtanh.f32 %v665_v46 }
 0xd0a   :  { %v2549_v47 = vpop.eup %2548 }
 0xd0b   :  { %668 = vrot.lane.b32.xlu0 %v2549_v47, %s2717_s26  ;;  %v1092_v47 = vld [vmem:[#allocation7 + $0x20] sm:$0xff] }
 0xd7d   :  { %v669_v48 = vpop.permute.xlu0 %668 }
 0xd7e   :  { %v671_v49 = vmul.f32 %v2547_v41, %v669_v48  ;;  %v996_v41 = vld [vmem:[#allocation4 + $0x20] sm:$0xff]  ;;  %v1093_v48 = vld [vmem:[#allocation7 + $0x28] sm:$0xff] }
 0xd7f   :  { %v2436_v43 = vpack.c.bf16 %v997_v42, %v996_v41 }
 0xd80   :  { %673 = vrot.lane.b32.xlu1 %v671_v49, %s2718_s27  ;;  %v1094_v49 = vld [vmem:[#allocation7 + $0x30] sm:$0xff] }
 0xd81   :  { %2437 = vmatprep.subr.bf16.mxu1 %v2436_v43 }
 0xdf2   :  { %v674_v50 = vpop.permute.xlu1 %673 }
 0xdf3   :  { %677 = vst.msk [vmem:[#allocation2 + $0x8] sm:$0x3] %vm256_vm2, %v674_v50  ;;  %2246 = vmatmul.mubr.msk.f32.vlgmr.msra.gmra.mrb[6].mxu0 %vm65_vm1, %v674_v50  ;;  %v2899_v50 = vpack.c.bf16 %v1093_v48, %v1092_v47 }
 0xdf4   :  { %2432 = vmatpush3.bf16.msra.mxu0 %v2792_v12  ;;  %2267 = vmatprep.mubr.msk.f32.mxu0 %vm2715_vm0, %v2716_v1 }
 0xdf5   :  { %2433 = vmatprep.subr.bf16.mxu0 %v2714_v0 }
 0xdf8   :  { %2435 = vmatpush3.bf16.msra.mxu0 %v2795_v14 }
 0xdf9   :  { %2444 = vmatprep.subr.bf16.mxu0 %v2714_v0 }
 0xec6   :  { %v748_v52 = vpop.f32.mrb[6].mxu0 }
 0xec7   :  { %v752_v53 = vadd.f32 %v748_v52, %v679_v51  ;;  %v2247_v54 = vpop.f32.mrb[7].mxu0  ;;  %v1095_v51 = vld [vmem:[#allocation7 + $0x38] sm:$0xff] }
 0xec8   :  { %v2902_v54 = vpack.c.bf16 %v1095_v51, %v1094_v49 }
 0xec9   :  { %2550 = vtanh.f32 %v752_v53  ;;  %v2046_v56 = vmul.f32 -1.442695, %v752_v53 }
 0xecb   :  { %2552 = vpow2.f32 %v2046_v56 }
 0xed3   :  { %v2551_v55 = vpop.eup %2550 }
 0xed4   :  { %762 = vrot.lane.b32.xlu0 %v2551_v55, %s2717_s26 }
 0xed5   :  { %v2553_v12 = vpop.eup %2552 }
 0xed6   :  { %v756_v57 = vadd.f32 1.0, %v2553_v12 }
 0xed8   :  { %2554 = vrcp.f32 %v756_v57 }
 0xee2   :  { %v2555_v58 = vpop.eup %2554 }
 0xee3   :  { %v760_v14 = vmul.f32 %v2555_v58, %v665_v46  ;;  %v2440_v46 = vpack.c.bf16 %v999_v45, %v998_v44 }
 0xf46   :  { %v763_v59 = vpop.permute.xlu0 %762 }
 0xf47   :  { %v765_v60 = vmul.f32 %v2555_v58, %v763_v59 }
 0xf49   :  { %767 = vrot.lane.b32.xlu1 %v765_v60, %s2718_s27 }
 0xfbb   :  { %v768_v61 = vpop.permute.xlu1 %767 }
 0xfbc   :  { %v770_v62 = vadd.f32 %v768_v61, %v760_v14 }
 0xfbe   :  { %2556 = vtanh.f32 %v770_v62 }
 0xfc8   :  { %v2557_v63 = vpop.eup %2556 }
 0xfc9   :  { %773 = vrot.lane.b32.xlu0 %v2557_v63, %s2717_s26 }
0x103b   :  { %v774_v2 = vpop.permute.xlu0 %773 }
0x103c   :  { %v776_v3 = vmul.f32 %v2555_v58, %v774_v2  ;;  %v2052_v58 = vld [vmem:[%s3036_s3 + $0x1] ss:$0 sm:$0xff] }
0x103e   :  { %778 = vrot.lane.b32.xlu1 %v776_v3, %s2718_s27 }
0x10b0   :  { %v779_v4 = vpop.permute.xlu1 %778 }
0x10b1   :  { %782 = vst.msk [vmem:[#allocation2 + $0xa] sm:$0x3] %vm256_vm2, %v779_v4  ;;  %2257 = vmatmul.mubr.msk.f32.vlgmr.msra.gmra.mrb[6].mxu1 %vm65_vm1, %v779_v4 }
0x10b2   :  { %2278 = vmatprep.mubr.msk.f32.mxu1 %vm65_vm1, %v993_v5  ;;  %2439 = vmatpush3.bf16.msra.mxu1 %v2436_v43 }
0x10b3   :  { %2441 = vmatprep.subr.bf16.mxu1 %v2440_v46 }
0x10b6   :  { %2443 = vmatpush3.bf16.msra.mxu1 %v2440_v46 }
0x10b7   :  { %2450 = vmatprep.subr.bf16.mxu1 %v2714_v0 }
0x1184   :  { %v853_v7 = vpop.f32.mrb[6].mxu1 }
0x1185   :  { %v857_v8 = vadd.f32 %v853_v7, %v784_v6  ;;  %v2258_v9 = vpop.f32.mrb[7].mxu1 }
0x1187   :  { %2558 = vtanh.f32 %v857_v8  ;;  %v2048_v11 = vmul.f32 -1.442695, %v857_v8 }
0x1189   :  { %2560 = vpow2.f32 %v2048_v11 }
0x1191   :  { %v2559_v10 = vpop.eup %2558 }
0x1192   :  { %867 = vrot.lane.b32.xlu0 %v2559_v10, %s2717_s26 }
0x1193   :  { %v2561_v13 = vpop.eup %2560 }
0x1194   :  { %v861_v15 = vadd.f32 1.0, %v2561_v13 }
0x1196   :  { %2562 = vrcp.f32 %v861_v15 }
0x11a0   :  { %v2563_v16 = vpop.eup %2562 }
0x11a1   :  { %v865_v19 = vmul.f32 %v2563_v16, %v770_v62 }
0x1204   :  { %v868_v17 = vpop.permute.xlu0 %867 }
0x1205   :  { %v870_v18 = vmul.f32 %v2563_v16, %v868_v17 }
0x1207   :  { %872 = vrot.lane.b32.xlu1 %v870_v18, %s2718_s27 }
0x1279   :  { %v873_v20 = vpop.permute.xlu1 %872 }
0x127a   :  { %v875_v21 = vadd.f32 %v873_v20, %v865_v19 }
0x127c   :  { %2564 = vtanh.f32 %v875_v21 }
0x1286   :  { %v2565_v22 = vpop.eup %2564 }
0x1287   :  { %878 = vrot.lane.b32.xlu0 %v2565_v22, %s2717_s26 }
0x12f9   :  { %v879_v23 = vpop.permute.xlu0 %878 }
0x12fa   :  { %v881_v24 = vmul.f32 %v2563_v16, %v879_v23 }
0x12fc   :  { %883 = vrot.lane.b32.xlu1 %v881_v24, %s2718_s27 }
0x136e   :  { %v884_v25 = vpop.permute.xlu1 %883 }
0x136f   :  { %887 = vst.msk [vmem:[#allocation2 + $0xc] sm:$0x3] %vm256_vm2, %v884_v25  ;;  %2268 = vmatmul.mubr.msk.f32.vlgmr.msra.gmra.mrb[8].mxu0 %vm65_vm1, %v884_v25 }
0x1370   :  { %2289 = vmatprep.mubr.msk.f32.mxu0 %vm2715_vm0, %v2716_v1  ;;  %2446 = vmatpush3.bf16.msra.mxu0 %v2899_v50 }
0x1371   :  { %2447 = vmatprep.subr.bf16.mxu0 %v2714_v0 }
0x1374   :  { %2449 = vmatpush3.bf16.msra.mxu0 %v2902_v54 }
0x1375   :  { %2456 = vmatprep.subr.bf16.mxu0 %v2714_v0 }
0x1377   :  { %2290 = vmatmul.mubr.f32.vlgmr.msra.gmra.mrb[10].mxu0 %v2716_v1 }
0x1378   :  { %2458 = vmatpush3.bf16.msra.mxu0 %v2899_v50  ;;  %2311 = vmatprep.mubr.msk.f32.mxu0 %vm2715_vm0, %v2716_v1 }
0x1379   :  { %2459 = vmatprep.subr.bf16.mxu0 %v2714_v0 }
0x137c   :  { %2461 = vmatpush3.bf16.msra.mxu0 %v2902_v54 }
0x137d   :  { %2468 = vmatprep.subr.bf16.mxu0 %v2714_v0 }
0x1442   :  { %v958_v27 = vpop.f32.mrb[8].mxu0 }
0x1443   :  { %v962_v28 = vadd.f32 %v958_v27, %v889_v26  ;;  %v2269_v29 = vpop.f32.mrb[9].mxu0 }
0x1445   :  { %2566 = vtanh.f32 %v962_v28  ;;  %v2050_v31 = vmul.f32 -1.442695, %v962_v28 }
0x1447   :  { %2568 = vpow2.f32 %v2050_v31 }
0x144a   :  { %v1163_v12 = vpop.f32.mrb[10].mxu0 }
0x144b   :  { %v2291_v57 = vpop.f32.mrb[11].mxu0 }
0x144f   :  { %v2567_v30 = vpop.eup %2566 }
0x1450   :  { %972 = vrot.lane.b32.xlu0 %v2567_v30, %s2717_s26 }
0x1451   :  { %v2569_v32 = vpop.eup %2568 }
0x1452   :  { %v966_v33 = vadd.f32 1.0, %v2569_v32 }
0x1454   :  { %2570 = vrcp.f32 %v966_v33 }
0x145e   :  { %v2571_v34 = vpop.eup %2570 }
0x145f   :  { %v970_v37 = vmul.f32 %v2571_v34, %v875_v21 }
0x14c2   :  { %v973_v35 = vpop.permute.xlu0 %972 }
0x14c3   :  { %v975_v36 = vmul.f32 %v2571_v34, %v973_v35 }
0x14c5   :  { %977 = vrot.lane.b32.xlu1 %v975_v36, %s2718_s27 }
0x1537   :  { %v978_v38 = vpop.permute.xlu1 %977 }
0x1538   :  { %v980_v39 = vadd.f32 %v978_v38, %v970_v37 }
0x153a   :  { %2572 = vtanh.f32 %v980_v39 }
0x1544   :  { %v2573_v40 = vpop.eup %2572 }
0x1545   :  { %983 = vrot.lane.b32.xlu0 %v2573_v40, %s2717_s26 }
0x15b7   :  { %v984_v52 = vpop.permute.xlu0 %983 }
0x15b8   :  { %v986_v53 = vmul.f32 %v2571_v34, %v984_v52 }
0x15ba   :  { %988 = vrot.lane.b32.xlu1 %v986_v53, %s2718_s27 }
0x162c   :  { %v989_v55 = vpop.permute.xlu1 %988 }
0x162d   :  { %992 = vst.msk [vmem:[#allocation2 + $0xe] sm:$0x3] %vm256_vm2, %v989_v55 }
0x1634   :  { %v994_v56 = vld [vmem:[#allocation2 + $0x8] sm:$0xff] }
0x1635   :  { %2279 = vmatmul.mubr.msk.f32.vlgmr.msra.gmra.mrb[8].mxu1 %vm65_vm1, %v994_v56 }
0x1636   :  { %2452 = vmatpush3.bf16.msra.mxu1 %v2899_v50  ;;  %2300 = vmatprep.mubr.msk.f32.mxu1 %vm2715_vm0, %v2716_v1 }
0x1637   :  { %2453 = vmatprep.subr.bf16.mxu1 %v2714_v0 }
0x163a   :  { %2455 = vmatpush3.bf16.msra.mxu1 %v2902_v54 }
0x163b   :  { %2462 = vmatprep.subr.bf16.mxu1 %v2714_v0 }
0x1708   :  { %v2280_v59 = vpop.f32.mrb[8].mxu1 }
0x1709   :  { %v1086_v60 = vadd.f32 %v2280_v59, %v2052_v58  ;;  %v1080_v14 = vpop.f32.mrb[9].mxu1 }
0x170a   :  { %v1081_v61 = vadd.f32 %v2052_v58, %v1080_v14 }
0x170b   :  { %1090 = vst [vmem:[#allocation3 + $0x8] sm:$0xff] %v1086_v60 }
0x170c   :  { %1089 = vst [vmem:[#allocation3] sm:$0xff] %v1081_v61 }
0x1713   :  { %v1096_v62 = vld [vmem:[#allocation3] sm:$0x3]  ;;  %v1197_v18 = vld [vmem:[#allocation3 + $0x2] sm:$0x3]  ;;  %v1300_v36 = vld [vmem:[#allocation3 + $0x4] sm:$0x3] }
0x1714   :  { %v1167_v63 = vadd.f32 %v1163_v12, %v1096_v62  ;;  %v1403_v56 = vld [vmem:[#allocation3 + $0x6] sm:$0x3] }
0x1716   :  { %2574 = vtanh.f32 %v1167_v63  ;;  %v2055_v3 = vmul.f32 -1.442695, %v1167_v63 }
0x1718   :  { %2576 = vpow2.f32 %v2055_v3 }
0x1720   :  { %v2575_v2 = vpop.eup %2574 }
0x1721   :  { %1177 = vrot.lane.b32.xlu0 %v2575_v2, %s2717_s26 }
0x1722   :  { %v2577_v4 = vpop.eup %2576 }
0x1723   :  { %v1171_v5 = vadd.f32 1.0, %v2577_v4 }
0x1725   :  { %2578 = vrcp.f32 %v1171_v5 }
0x172f   :  { %v2579_v6 = vpop.eup %2578 }
0x1730   :  { %v1175_v9 = vmul.f32 0.0, %v2579_v6 }
0x1793   :  { %v1178_v7 = vpop.permute.xlu0 %1177 }
0x1794   :  { %v1180_v8 = vmul.f32 %v2579_v6, %v1178_v7 }
0x1796   :  { %1182 = vrot.lane.b32.xlu1 %v1180_v8, %s2718_s27 }
0x1808   :  { %v1183_v10 = vpop.permute.xlu1 %1182 }
0x1809   :  { %v1185_v11 = vadd.f32 %v1183_v10, %v1175_v9  ;;  %v1506_v10 = vld [vmem:[#allocation3 + $0x8] sm:$0x3] }
0x180b   :  { %2580 = vtanh.f32 %v1185_v11 }
0x1815   :  { %v2581_v13 = vpop.eup %2580 }
0x1816   :  { %1188 = vrot.lane.b32.xlu0 %v2581_v13, %s2717_s26 }
0x1888   :  { %v1189_v15 = vpop.permute.xlu0 %1188 }
0x1889   :  { %v1191_v16 = vmul.f32 %v2579_v6, %v1189_v15 }
0x188b   :  { %1193 = vrot.lane.b32.xlu1 %v1191_v16, %s2718_s27 }
0x18fd   :  { %v1194_v17 = vpop.permute.xlu1 %1193 }
0x18fe   :  { %1196 = vst.msk [vmem:[#allocation2] sm:$0x3] %vm256_vm2, %v1194_v17  ;;  %2301 = vmatmul.mubr.msk.f32.vlgmr.msra.gmra.mrb[10].mxu1 %vm65_vm1, %v1194_v17 }
0x18ff   :  { %2464 = vmatpush3.bf16.msra.mxu1 %v2899_v50  ;;  %2322 = vmatprep.mubr.msk.f32.mxu1 %vm2715_vm0, %v2716_v1 }
0x1900   :  { %2465 = vmatprep.subr.bf16.mxu1 %v2714_v0 }
0x1903   :  { %2467 = vmatpush3.bf16.msra.mxu1 %v2902_v54 }
0x1904   :  { %2474 = vmatprep.subr.bf16.mxu1 %v2714_v0 }
0x19d1   :  { %v1266_v19 = vpop.f32.mrb[10].mxu1 }
0x19d2   :  { %v1270_v20 = vadd.f32 %v1266_v19, %v1197_v18  ;;  %v2302_v21 = vpop.f32.mrb[11].mxu1 }
0x19d4   :  { %2582 = vtanh.f32 %v1270_v20  ;;  %v2057_v23 = vmul.f32 -1.442695, %v1270_v20 }
0x19d6   :  { %2584 = vpow2.f32 %v2057_v23 }
0x19de   :  { %v2583_v22 = vpop.eup %2582 }
0x19df   :  { %1280 = vrot.lane.b32.xlu0 %v2583_v22, %s2717_s26 }
0x19e0   :  { %v2585_v24 = vpop.eup %2584 }
0x19e1   :  { %v1274_v25 = vadd.f32 1.0, %v2585_v24 }
0x19e3   :  { %2586 = vrcp.f32 %v1274_v25 }
0x19ed   :  { %v2587_v26 = vpop.eup %2586 }
0x19ee   :  { %v1278_v29 = vmul.f32 %v2587_v26, %v1185_v11 }
0x1a51   :  { %v1281_v27 = vpop.permute.xlu0 %1280 }
0x1a52   :  { %v1283_v28 = vmul.f32 %v2587_v26, %v1281_v27 }
0x1a54   :  { %1285 = vrot.lane.b32.xlu1 %v1283_v28, %s2718_s27 }
0x1ac6   :  { %v1286_v30 = vpop.permute.xlu1 %1285 }
0x1ac7   :  { %v1288_v31 = vadd.f32 %v1286_v30, %v1278_v29  ;;  %v1609_v30 = vld [vmem:[#allocation3 + $0xa] sm:$0x3] }
0x1ac9   :  { %2588 = vtanh.f32 %v1288_v31 }
0x1ad3   :  { %v2589_v32 = vpop.eup %2588 }
0x1ad4   :  { %1291 = vrot.lane.b32.xlu0 %v2589_v32, %s2717_s26 }
0x1b46   :  { %v1292_v33 = vpop.permute.xlu0 %1291 }
0x1b47   :  { %v1294_v34 = vmul.f32 %v2587_v26, %v1292_v33 }
0x1b49   :  { %1296 = vrot.lane.b32.xlu1 %v1294_v34, %s2718_s27 }
0x1bbb   :  { %v1297_v35 = vpop.permute.xlu1 %1296 }
0x1bbc   :  { %1299 = vst.msk [vmem:[#allocation2 + $0x2] sm:$0x3] %vm256_vm2, %v1297_v35  ;;  %2312 = vmatmul.mubr.msk.f32.vlgmr.msra.gmra.mrb[12].mxu0 %vm65_vm1, %v1297_v35 }
0x1bbd   :  { %2470 = vmatpush3.bf16.msra.mxu0 %v2899_v50  ;;  %2333 = vmatprep.mubr.msk.f32.mxu0 %vm2715_vm0, %v2716_v1 }
0x1bbe   :  { %2471 = vmatprep.subr.bf16.mxu0 %v2714_v0 }
0x1bc1   :  { %2473 = vmatpush3.bf16.msra.mxu0 %v2902_v54 }
0x1bc2   :  { %2480 = vmatprep.subr.bf16.mxu0 %v2714_v0 }
0x1c8f   :  { %v1369_v37 = vpop.f32.mrb[12].mxu0 }
0x1c90   :  { %v1373_v38 = vadd.f32 %v1369_v37, %v1300_v36  ;;  %v2313_v39 = vpop.f32.mrb[13].mxu0 }
0x1c92   :  { %2590 = vtanh.f32 %v1373_v38  ;;  %v2059_v41 = vmul.f32 -1.442695, %v1373_v38 }
0x1c94   :  { %2592 = vpow2.f32 %v2059_v41 }
0x1c9c   :  { %v2591_v40 = vpop.eup %2590 }
0x1c9d   :  { %1383 = vrot.lane.b32.xlu0 %v2591_v40, %s2717_s26 }
0x1c9e   :  { %v2593_v42 = vpop.eup %2592 }
0x1c9f   :  { %v1377_v43 = vadd.f32 1.0, %v2593_v42 }
0x1ca1   :  { %2594 = vrcp.f32 %v1377_v43 }
0x1cab   :  { %v2595_v44 = vpop.eup %2594 }
0x1cac   :  { %v1381_v47 = vmul.f32 %v2595_v44, %v1288_v31 }
0x1d0f   :  { %v1384_v45 = vpop.permute.xlu0 %1383 }
0x1d10   :  { %v1386_v46 = vmul.f32 %v2595_v44, %v1384_v45  ;;  %v1712_v45 = vld [vmem:[#allocation3 + $0xc] sm:$0x3] }
0x1d12   :  { %1388 = vrot.lane.b32.xlu1 %v1386_v46, %s2718_s27 }
0x1d84   :  { %v1389_v48 = vpop.permute.xlu1 %1388 }
0x1d85   :  { %v1391_v49 = vadd.f32 %v1389_v48, %v1381_v47 }
0x1d87   :  { %2596 = vtanh.f32 %v1391_v49 }
0x1d91   :  { %v2597_v51 = vpop.eup %2596 }
0x1d92   :  { %1394 = vrot.lane.b32.xlu0 %v2597_v51, %s2717_s26 }
0x1e04   :  { %v1395_v52 = vpop.permute.xlu0 %1394 }
0x1e05   :  { %v1397_v53 = vmul.f32 %v2595_v44, %v1395_v52 }
0x1e07   :  { %1399 = vrot.lane.b32.xlu1 %v1397_v53, %s2718_s27 }
0x1e79   :  { %v1400_v55 = vpop.permute.xlu1 %1399 }
0x1e7a   :  { %1402 = vst.msk [vmem:[#allocation2 + $0x4] sm:$0x3] %vm256_vm2, %v1400_v55  ;;  %2323 = vmatmul.mubr.msk.f32.vlgmr.msra.gmra.mrb[12].mxu1 %vm65_vm1, %v1400_v55 }
0x1e7b   :  { %2476 = vmatpush3.bf16.msra.mxu1 %v2899_v50  ;;  %2344 = vmatprep.mubr.msk.f32.mxu1 %vm2715_vm0, %v2716_v1 }
0x1e7c   :  { %2477 = vmatprep.subr.bf16.mxu1 %v2714_v0 }
0x1e7f   :  { %2479 = vmatpush3.bf16.msra.mxu1 %v2902_v54 }
0x1e80   :  { %2486 = vmatprep.subr.bf16.mxu1 %v2714_v0 }
0x1f4d   :  { %v1472_v12 = vpop.f32.mrb[12].mxu1 }
0x1f4e   :  { %v1476_v57 = vadd.f32 %v1472_v12, %v1403_v56  ;;  %v2324_v58 = vpop.f32.mrb[13].mxu1 }
0x1f50   :  { %2598 = vtanh.f32 %v1476_v57  ;;  %v2061_v60 = vmul.f32 -1.442695, %v1476_v57 }
0x1f52   :  { %2600 = vpow2.f32 %v2061_v60 }
0x1f5a   :  { %v2599_v59 = vpop.eup %2598 }
0x1f5b   :  { %1486 = vrot.lane.b32.xlu0 %v2599_v59, %s2717_s26 }
0x1f5c   :  { %v2601_v14 = vpop.eup %2600 }
0x1f5d   :  { %v1480_v61 = vadd.f32 1.0, %v2601_v14 }
0x1f5f   :  { %2602 = vrcp.f32 %v1480_v61 }
0x1f69   :  { %v2603_v62 = vpop.eup %2602 }
0x1f6a   :  { %v1484_v3 = vmul.f32 %v2603_v62, %v1391_v49 }
0x1fcd   :  { %v1487_v63 = vpop.permute.xlu0 %1486 }
0x1fce   :  { %v1489_v2 = vmul.f32 %v2603_v62, %v1487_v63  ;;  %v1815_v63 = vld [vmem:[#allocation3 + $0xe] sm:$0x3] }
0x1fd0   :  { %1491 = vrot.lane.b32.xlu1 %v1489_v2, %s2718_s27 }
0x2042   :  { %v1492_v4 = vpop.permute.xlu1 %1491 }
0x2043   :  { %v1494_v5 = vadd.f32 %v1492_v4, %v1484_v3 }
0x2045   :  { %2604 = vtanh.f32 %v1494_v5 }
0x204f   :  { %v2605_v6 = vpop.eup %2604 }
0x2050   :  { %1497 = vrot.lane.b32.xlu0 %v2605_v6, %s2717_s26 }
0x20c2   :  { %v1498_v7 = vpop.permute.xlu0 %1497 }
0x20c3   :  { %v1500_v8 = vmul.f32 %v2603_v62, %v1498_v7 }
0x20c5   :  { %1502 = vrot.lane.b32.xlu1 %v1500_v8, %s2718_s27 }
0x2137   :  { %v1503_v9 = vpop.permute.xlu1 %1502 }
0x2138   :  { %1505 = vst.msk [vmem:[#allocation2 + $0x6] sm:$0x3] %vm256_vm2, %v1503_v9  ;;  %2334 = vmatmul.mubr.msk.f32.vlgmr.msra.gmra.mrb[14].mxu0 %vm65_vm1, %v1503_v9 }
0x2139   :  { %2482 = vmatpush3.bf16.msra.mxu0 %v2899_v50  ;;  %2355 = vmatprep.mubr.msk.f32.mxu0 %vm2715_vm0, %v2716_v1 }
0x213a   :  { %2483 = vmatprep.subr.bf16.mxu0 %v2714_v0 }
0x213d   :  { %2485 = vmatpush3.bf16.msra.mxu0 %v2902_v54 }
0x213f   :  { %v1918_v44 = vld [vmem:[#allocation2] sm:$0xff] }
0x220b   :  { %v1575_v11 = vpop.f32.mrb[14].mxu0 }
0x220c   :  { %v1579_v13 = vadd.f32 %v1575_v11, %v1506_v10  ;;  %v2335_v15 = vpop.f32.mrb[15].mxu0 }
0x220e   :  { %2606 = vtanh.f32 %v1579_v13  ;;  %v2063_v17 = vmul.f32 -1.442695, %v1579_v13 }
0x2210   :  { %2608 = vpow2.f32 %v2063_v17 }
0x2218   :  { %v2607_v16 = vpop.eup %2606 }
0x2219   :  { %1589 = vrot.lane.b32.xlu0 %v2607_v16, %s2717_s26 }
0x221a   :  { %v2609_v18 = vpop.eup %2608 }
0x221b   :  { %v1583_v19 = vadd.f32 1.0, %v2609_v18  ;;  %v1920_v18 = vld [vmem:[%s3037_s4] sm:$0xff] }
0x221d   :  { %2610 = vrcp.f32 %v1583_v19  ;;  %v1921_v19 = vld [vmem:[%s3037_s4 + $0x8] sm:$0xff] }
0x2227   :  { %v2611_v20 = vpop.eup %2610 }
0x2228   :  { %v1587_v23 = vmul.f32 %v2611_v20, %v1494_v5 }
0x228b   :  { %v1590_v21 = vpop.permute.xlu0 %1589 }
0x228c   :  { %v1592_v22 = vmul.f32 %v2611_v20, %v1590_v21  ;;  %v1922_v21 = vld [vmem:[%s3037_s4 + $0x10] sm:$0xff] }
0x228e   :  { %1594 = vrot.lane.b32.xlu1 %v1592_v22, %s2718_s27  ;;  %v1923_v22 = vld [vmem:[%s3037_s4 + $0x18] sm:$0xff]  ;;  %s2719_s4 = smov [#allocation9]  }
0x228f   :  { %s2020_s17 = sshll.u32 %s2719_s4, 4  ;;  %s2021_s17 = int_to_ptr.vmem [resolvable:$true] %s2020_s17 }
0x2290   :  { %s2682_s18 = scalar_lea.vmem %s2021_s17, 256  ;;  %p2687_p3 = scmp.lt.s32.totalorder %s2021_s17, %s2021_s17 }
0x2291   :  { %p2683_p2 = scmp.ne.s32.totalorder %s2021_s17, %s2682_s18  ;;  %p2688_p4 = scmp.lt.s32.totalorder %s2682_s18, %s2682_s18 }
0x2293   :  { %p2689_p5 = por %p2688_p4, %p2687_p3 }
0x2295   :  { %p2690_p6 = pnand %p2689_p5, %p2683_p2 }
0x2300   :  { %v1595_v24 = vpop.permute.xlu1 %1594 }
0x2301   :  { %v1597_v25 = vadd.f32 %v1595_v24, %v1587_v23  ;;  %v2496_v23 = vpack.c.bf16 %v1923_v22, %v1922_v21 }
0x2303   :  { %2612 = vtanh.f32 %v1597_v25 }
0x230d   :  { %v2613_v26 = vpop.eup %2612 }
0x230e   :  { %1600 = vrot.lane.b32.xlu0 %v2613_v26, %s2717_s26 }
0x2380   :  { %v1601_v27 = vpop.permute.xlu0 %1600 }
0x2381   :  { %v1603_v28 = vmul.f32 %v2611_v20, %v1601_v27  ;;  %v2492_v20 = vpack.c.bf16 %v1921_v19, %v1920_v18 }
0x2383   :  { %1605 = vrot.lane.b32.xlu1 %v1603_v28, %s2718_s27  ;;  %2493 = vmatprep.subr.bf16.mxu0 %v2492_v20  ;;  %v2070_v28 = vld [vmem:[%s3038_s5] ss:$0 sm:$0xff] }
0x23f5   :  { %v1606_v29 = vpop.permute.xlu1 %1605 }
0x23f6   :  { %1608 = vst.msk [vmem:[#allocation2 + $0x8] sm:$0x3] %vm256_vm2, %v1606_v29  ;;  %2345 = vmatmul.mubr.msk.f32.vlgmr.msra.gmra.mrb[14].mxu1 %vm65_vm1, %v1606_v29 }
0x23f7   :  { %2488 = vmatpush3.bf16.msra.mxu1 %v2899_v50  ;;  %2366 = vmatprep.mubr.msk.f32.mxu1 %vm2715_vm0, %v2716_v1 }
0x23f8   :  { %2489 = vmatprep.subr.bf16.mxu1 %v2714_v0 }
0x23fb   :  { %2491 = vmatpush3.bf16.msra.mxu1 %v2902_v54 }
0x24c9   :  { %v1678_v31 = vpop.f32.mrb[14].mxu1 }
0x24ca   :  { %v1682_v32 = vadd.f32 %v1678_v31, %v1609_v30  ;;  %v2346_v33 = vpop.f32.mrb[15].mxu1 }
0x24cc   :  { %2614 = vtanh.f32 %v1682_v32  ;;  %v2065_v35 = vmul.f32 -1.442695, %v1682_v32 }
0x24ce   :  { %2616 = vpow2.f32 %v2065_v35 }
0x24d6   :  { %v2615_v34 = vpop.eup %2614 }
0x24d7   :  { %1692 = vrot.lane.b32.xlu0 %v2615_v34, %s2717_s26 }
0x24d8   :  { %v2617_v36 = vpop.eup %2616 }
0x24d9   :  { %v1686_v37 = vadd.f32 1.0, %v2617_v36 }
0x24db   :  { %2618 = vrcp.f32 %v1686_v37 }
0x24e5   :  { %v2619_v50 = vpop.eup %2618 }
0x24e6   :  { %v1690_v0 = vmul.f32 %v2619_v50, %v1597_v25 }
0x2549   :  { %v1693_v38 = vpop.permute.xlu0 %1692 }
0x254a   :  { %v1695_v1 = vmul.f32 %v2619_v50, %v1693_v38 }
0x254c   :  { %1697 = vrot.lane.b32.xlu1 %v1695_v1, %s2718_s27 }
0x25be   :  { %v1698_v54 = vpop.permute.xlu1 %1697 }
0x25bf   :  { %v1700_v39 = vadd.f32 %v1698_v54, %v1690_v0 }
0x25c1   :  { %2620 = vtanh.f32 %v1700_v39 }
0x25cb   :  { %v2621_v40 = vpop.eup %2620 }
0x25cc   :  { %1703 = vrot.lane.b32.xlu0 %v2621_v40, %s2717_s26 }
0x263e   :  { %v1704_v41 = vpop.permute.xlu0 %1703 }
0x263f   :  { %v1706_v42 = vmul.f32 %v2619_v50, %v1704_v41 }
0x2641   :  { %1708 = vrot.lane.b32.xlu1 %v1706_v42, %s2718_s27 }
0x26b3   :  { %v1709_v43 = vpop.permute.xlu1 %1708 }
0x26b4   :  { %1711 = vst.msk [vmem:[#allocation2 + $0xa] sm:$0x3] %vm256_vm2, %v1709_v43  ;;  %2356 = vmatmul.mubr.msk.f32.vlgmr.msra.gmra.mrb[16].mxu0 %vm65_vm1, %v1709_v43 }
0x26b5   :  { %2377 = vmatprep.mubr.msk.f32.mxu0 %vm65_vm1, %v1918_v44  ;;  %2495 = vmatpush3.bf16.msra.mxu0 %v2492_v20 }
0x26b6   :  { %2497 = vmatprep.subr.bf16.mxu0 %v2496_v23 }
0x26b9   :  { %2499 = vmatpush3.bf16.msra.mxu0 %v2496_v23 }
0x2787   :  { %v1781_v46 = vpop.f32.mrb[16].mxu0 }
0x2788   :  { %v1785_v47 = vadd.f32 %v1781_v46, %v1712_v45  ;;  %v2357_v48 = vpop.f32.mrb[17].mxu0 }
0x278a   :  { %2622 = vtanh.f32 %v1785_v47  ;;  %v2067_v51 = vmul.f32 -1.442695, %v1785_v47 }
0x278c   :  { %2624 = vpow2.f32 %v2067_v51 }
0x2794   :  { %v2623_v49 = vpop.eup %2622 }
0x2795   :  { %1795 = vrot.lane.b32.xlu0 %v2623_v49, %s2717_s26 }
0x2796   :  { %v2625_v52 = vpop.eup %2624 }
0x2797   :  { %v1789_v53 = vadd.f32 1.0, %v2625_v52 }
0x2799   :  { %2626 = vrcp.f32 %v1789_v53 }
0x27a3   :  { %v2627_v55 = vpop.eup %2626 }
0x27a4   :  { %v1793_v57 = vmul.f32 %v2627_v55, %v1700_v39 }
0x2807   :  { %v1796_v56 = vpop.permute.xlu0 %1795 }
0x2808   :  { %v1798_v12 = vmul.f32 %v2627_v55, %v1796_v56 }
0x280a   :  { %1800 = vrot.lane.b32.xlu1 %v1798_v12, %s2718_s27 }
0x287c   :  { %v1801_v58 = vpop.permute.xlu1 %1800 }
0x287d   :  { %v1803_v59 = vadd.f32 %v1801_v58, %v1793_v57 }
0x287f   :  { %2628 = vtanh.f32 %v1803_v59 }
0x2889   :  { %v2629_v60 = vpop.eup %2628 }
0x288a   :  { %1806 = vrot.lane.b32.xlu0 %v2629_v60, %s2717_s26 }
0x28fc   :  { %v1807_v14 = vpop.permute.xlu0 %1806 }
0x28fd   :  { %v1809_v61 = vmul.f32 %v2627_v55, %v1807_v14 }
0x28ff   :  { %1811 = vrot.lane.b32.xlu1 %v1809_v61, %s2718_s27 }
0x2971   :  { %v1812_v62 = vpop.permute.xlu1 %1811 }
0x2972   :  { %1814 = vst.msk [vmem:[#allocation2 + $0xc] sm:$0x3] %vm256_vm2, %v1812_v62  ;;  %2367 = vmatmul.mubr.msk.f32.vlgmr.msra.gmra.mrb[16].mxu1 %vm65_vm1, %v1812_v62 }
0x2a45   :  { %v1884_v2 = vpop.f32.mrb[16].mxu1 }
0x2a46   :  { %v1888_v3 = vadd.f32 %v1884_v2, %v1815_v63  ;;  %v2368_v4 = vpop.f32.mrb[17].mxu1 }
0x2a48   :  { %2630 = vtanh.f32 %v1888_v3  ;;  %v2069_v6 = vmul.f32 -1.442695, %v1888_v3 }
0x2a4a   :  { %2632 = vpow2.f32 %v2069_v6 }
0x2a52   :  { %v2631_v5 = vpop.eup %2630 }
0x2a53   :  { %1898 = vrot.lane.b32.xlu0 %v2631_v5, %s2717_s26 }
0x2a54   :  { %v2633_v7 = vpop.eup %2632 }
0x2a55   :  { %v1892_v8 = vadd.f32 1.0, %v2633_v7 }
0x2a57   :  { %2634 = vrcp.f32 %v1892_v8 }
0x2a61   :  { %v2635_v9 = vpop.eup %2634 }
0x2a62   :  { %v1896_v13 = vmul.f32 %v2635_v9, %v1803_v59 }
0x2ac5   :  { %v1899_v10 = vpop.permute.xlu0 %1898 }
0x2ac6   :  { %v1901_v11 = vmul.f32 %v2635_v9, %v1899_v10 }
0x2ac8   :  { %1903 = vrot.lane.b32.xlu1 %v1901_v11, %s2718_s27 }
0x2b3a   :  { %v1904_v15 = vpop.permute.xlu1 %1903 }
0x2b3b   :  { %v1906_v16 = vadd.f32 %v1904_v15, %v1896_v13 }
0x2b3d   :  { %2636 = vtanh.f32 %v1906_v16 }
0x2b47   :  { %v2637_v17 = vpop.eup %2636 }
0x2b48   :  { %1909 = vrot.lane.b32.xlu0 %v2637_v17, %s2717_s26 }
0x2bba   :  { %v1910_v24 = vpop.permute.xlu0 %1909 }
0x2bbb   :  { %v1912_v25 = vmul.f32 %v2635_v9, %v1910_v24 }
0x2bbd   :  { %1914 = vrot.lane.b32.xlu1 %v1912_v25, %s2718_s27 }
0x2c2f   :  { %v1915_v26 = vpop.permute.xlu1 %1914 }
0x2c30   :  { %1917 = vst.msk [vmem:[#allocation2 + $0xe] sm:$0x3] %vm256_vm2, %v1915_v26 }
0x2c37   :  { %v1919_v27 = vld [vmem:[#allocation2 + $0x8] sm:$0xff] }
0x2c38   :  { %2378 = vmatmul.mubr.msk.f32.vlgmr.msra.gmra.mrb[18].mxu0 %vm65_vm1, %v1919_v27 }
0x2d0b   :  { %v2379_v29 = vpop.f32.mrb[18].mxu0 }
0x2d0c   :  { %v2009_v30 = vadd.f32 %v2379_v29, %v2070_v28  ;;  %v2003_v31 = vpop.f32.mrb[19].mxu0 }
0x2d0d   :  { %v2004_v32 = vadd.f32 %v2070_v28, %v2003_v31 }
0x2d0e   :  { %2014 = vst.msk [vmem:[#allocation9 + $0x8] sm:$0xff] %vm2012_vm3, %v2009_v30 }
0x2d0f   :  { %2013 = vst.msk [vmem:[#allocation9] sm:$0xff] %vm2012_vm3, %v2004_v32 }
0x2d10   :  { %2693 = shalt.err (!%p2690_p6)
}
0x2d11   :  { %s2694_s5 = scalar_lea.hbm %s3039_s6, 256 }
0x2d12   :  { %p2695_p7 = scmp.ne.s32.totalorder %s3039_s6, %s2694_s5  ;;  %p2698_p8 = scmp.lt.u32.totalorder %s2694_s5, %s3039_s6 }
0x2d14   :  { %p2700_p9 = pnand %p2698_p8, %p2695_p7 }
0x2d16   :  { %2703 = shalt.err (!%p2700_p9)
}
0x2d17   :  { %2026 = dma.vmem_to_hbm [thread:$0]  %s2021_s17, 256, %s3039_s6, [#allocation6], %s2711_s7, %s2711_s7, %s2712_s8  }
0x2d18   :  { %2708 = dma.done.wait [#allocation6], 256  }
0x2d19   :  { %2709 = vsyncadd [#allocation6], 4294967040 }
0x2d1a   :  { %2030 = vsyncpa [#allocation5], 1 }
0x2d1b   :  { %2031 = vsyncpa [#allocation8], 1 }
0x2d1c   :  { %2032 = vsyncpa [#allocation6], 1 }

</bundles_post_ra>
